<compile_context>
chip_gen: v7x
topology: tpu7x:2x2x1
jax: 0.10.0
libtpu: 0.0.40
codegen_flags: <defaults>
</compile_context>

<pallas_src>
import math
import jax
import jax.numpy as jnp
from jax.experimental import pallas as pl
from jax.experimental.pallas import tpu as pltpu

# ---------------- configuration (args of RetNetDecoder) ----------------
B, S = 2, 8            # batch, sequence length
D = 32                 # decoder_embed_dim
DV = 32                # decoder_value_embed_dim
H = 2                  # decoder_retention_heads
DK = D // H            # key dim per head  (16)
DH = DV // H           # value dim per head (16)
FFN = 64               # decoder_ffn_embed_dim
VOCAB = 64             # vocab_size
VPAD = 128             # vocab padded to a full lane tile for lane-dense stores
L = 2                  # decoder_layers
EPS = 1e-6             # layernorm_eps
SCALING = DK ** (-0.5)
EMBED_SCALE = math.sqrt(D)   # no_scale_embedding = False
BS = B * S             # 16
CW = 2 * D + 2 * DV    # fused q|k|v|g width == packed-consts lane width (128)
LN_OFF = H * BS        # lane offset of the RMSNorm rows inside the tail block

assert DK % 2 == 0
assert CW % 128 == 0 and VPAD % 128 == 0
assert 2 * D <= CW and LN_OFF + D <= CW and 2 * L + 1 <= BS
# dropout = 0, drop_path = 0, deepnorm = False (alpha = 1), multiway = False,
# decoder_normalize_before = True, activation_fn = gate_fn = 'swish'.


def _rms(x, eps=EPS):
    return x * jax.lax.rsqrt(jnp.mean(x * x, axis=-1, keepdims=True) + eps)


# ---------------- the fused Pallas kernel ----------------
def retnet_kernel(x_ref, c_ref, wqkvg_ref, wo_ref, wgf_ref, wfc2_ref,
                  wout_ref, o_ref):
    x = x_ref[...]                         # (BS, D) resident activations
    # packed per-row constants (one lane-dense buffer):
    cosc = c_ref[0 * BS:1 * BS, :]         # cos on q lanes | cos*scaling on k lanes | 0
    sinA = c_ref[1 * BS:2 * BS, :]         # multiplies roll(x,-1): -sin on even lanes
    sinB = c_ref[2 * BS:3 * BS, :]         # multiplies roll(x,+1): +sin on odd lanes
    tail = c_ref[3 * BS:4 * BS, :]         # per-head decay masks + RMSNorm scales
    masks = [tail[:, hd * BS:(hd + 1) * BS] for hd in range(H)]   # (BS,BS) block-diag

    for l in range(L):                     # static unroll; all weights resident in VMEM
        # ---- multi-scale retention sub-block (pre-norm) ----
        ln1 = tail[l:l + 1, LN_OFF:LN_OFF + D]
        h = _rms(x) * ln1
        qkvg = jnp.dot(h, wqkvg_ref[l],
                       preferred_element_type=jnp.float32)        # (BS, 128)

        # theta_shift on the fused q|k lanes: pure XLU rolls + VPU muls (exact
        # f32).  rotate_every_two pairs never straddle the q/k lane boundary
        # (DK even), and all wrap-around / cross-region lanes hit zeros in the
        # sin/cos masks.  k-scaling is folded into the k lanes of the consts.
        shifted = (qkvg * cosc
                   + pltpu.roll(qkvg, CW - 1, 1) * sinA            # x[j+1] (even j)
                   + pltpu.roll(qkvg, 1, 1) * sinB)                # x[j-1] (odd j)
        v = qkvg[:, 2 * D:2 * D + DV]
        g = qkvg[:, 2 * D + DV:]
        wo_l = wo_ref[l]                                           # (DV, D)

        # retention per head over the full (BS, BS) score matrix; cross-batch
        # entries are exactly zero via the block-diagonal decay mask.
        for hd in range(H):
            qh = shifted[:, hd * DK:(hd + 1) * DK]                 # rotated q
            kh = shifted[:, D + hd * DK:D + (hd + 1) * DK]         # rotated+scaled k
            vh = v[:, hd * DH:(hd + 1) * DH]
            qk = jax.lax.dot_general(qh, kh, (((1,), (1,)), ((), ())),
                                     preferred_element_type=jnp.float32)  # (BS,BS)
            qk = qk * masks[hd]
            den = jnp.clip(jnp.sum(jnp.abs(qk), axis=-1, keepdims=True),
                           1.0, 5e4)
            qk = qk * pl.reciprocal(den, approx=True)
            ob = jnp.dot(qk, vh, preferred_element_type=jnp.float32)      # (BS,DH)
            # group_norm (RMSNorm over head_dim, no affine), swish gate, and
            # accumulate the head straight into the residual stream through
            # the matching row-slice of out_proj (no VMEM scratch round trip).
            oh = jax.nn.silu(g[:, hd * DH:(hd + 1) * DH]) * _rms(ob)
            x = x + jnp.dot(oh, wo_l[hd * DH:(hd + 1) * DH, :],
                            preferred_element_type=jnp.float32)

        # ---- GLU FFN sub-block (pre-norm) ----
        ln2 = tail[L + l:L + l + 1, LN_OFF:LN_OFF + D]
        h2 = _rms(x) * ln2
        gf = jnp.dot(h2, wgf_ref[l],
                     preferred_element_type=jnp.float32)           # (BS, 2*FFN)
        a = jax.nn.silu(gf[:, FFN:]) * gf[:, :FFN]                 # silu(fc1) * gate
        x = x + jnp.dot(a, wfc2_ref[l],
                        preferred_element_type=jnp.float32)

    # ---- final RMSNorm + (vocab-padded, lane-dense) output projection ----
    lnf = tail[2 * L:2 * L + 1, LN_OFF:LN_OFF + D]
    hf = _rms(x) * lnf
    o_ref[...] = jnp.dot(hf, wout_ref[...],
                         preferred_element_type=jnp.float32)        # (BS, VPAD)


# ---------------- wrapper ----------------
@jax.jit
def retnet_forward_pallas(tokens, embed, w_out, ln_final, layers, consts):
    sin, cos, mask = consts
    x = (EMBED_SCALE * embed[tokens]).reshape(BS, D)          # embedding = glue

    # stacked / fused weights (built once in XLA glue).
    wqkvg = jnp.stack([jnp.concatenate([lyr[1], lyr[2], lyr[3], lyr[4]],
                                       axis=1) for lyr in layers])        # (L,D,128)
    wo_s = jnp.stack([lyr[5] for lyr in layers])                          # (L,DV,D)
    wgf_s = jnp.stack([jnp.concatenate([lyr[7], lyr[8]], axis=1)
                       for lyr in layers])                                # (L,D,2*FFN)
    wfc2_s = jnp.stack([lyr[9] for lyr in layers])                        # (L,FFN,D)
    wout_p = jnp.pad(w_out, ((0, 0), (0, VPAD - VOCAB)))                  # (D,128)

    # ---- one packed, lane-dense constants buffer (4*BS, CW) ----
    cos_q = jnp.tile(cos, (B, H))                                         # (BS, D)
    sin_q = jnp.tile(sin, (B, H))                                         # (BS, D)
    even = (jnp.arange(D) % 2 == 0)
    sinA_q = jnp.where(even, -sin_q, 0.0)    # pairs with roll(x, -1)
    sinB_q = jnp.where(even, 0.0, sin_q)     # pairs with roll(x, +1)

    def qk_lanes(a):   # q lanes plain, k lanes pre-scaled, rest zero
        return jnp.pad(jnp.concatenate([a, a * SCALING], axis=1),
                       ((0, 0), (0, CW - 2 * D)))

    cos128 = qk_lanes(cos_q)
    sinA128 = qk_lanes(sinA_q)
    sinB128 = qk_lanes(sinB_q)

    eye_b = jnp.eye(B, dtype=jnp.float32)
    mask_bd = jnp.concatenate([jnp.kron(eye_b, mask[hd]) for hd in range(H)],
                              axis=1)                                     # (BS, H*BS)
    ln_rows = jnp.stack([lyr[0] for lyr in layers]
                        + [lyr[6] for lyr in layers]
                        + [ln_final])                                     # (2L+1, D)
    ln_block = jnp.pad(ln_rows, ((0, BS - (2 * L + 1)), (0, 0)))          # (BS, D)
    tail = jnp.concatenate(
        [mask_bd, ln_block,
         jnp.zeros((BS, CW - LN_OFF - D), jnp.float32)], axis=1)          # (BS, CW)
    consts_buf = jnp.concatenate([cos128, sinA128, sinB128, tail], axis=0)  # (4*BS, CW)

    # Gridless pallas_call: whole operands resident in VMEM, one invocation.
    out = pl.pallas_call(
        retnet_kernel,
        out_shape=jax.ShapeDtypeStruct((BS, VPAD), jnp.float32),
    )(x, consts_buf, wqkvg, wo_s, wgf_s, wfc2_s, wout_p)

    return out[:, :VOCAB].reshape(B, S, VOCAB)


# ---------------- rel-pos constants (RetNetRelPos, parallel branch) --------
def build_rel_pos(slen):
    half = DK // 2
    angle = 1.0 / (10000 ** jnp.linspace(0.0, 1.0, half))
    angle = jnp.repeat(angle, 2)                                  # (DK,)
    decay = jnp.log(1.0 - 2.0 ** (-5.0 - jnp.arange(H, dtype=jnp.float32)))
    idx = jnp.arange(slen, dtype=jnp.float32)
    sin = jnp.sin(idx[:, None] * angle[None, :])                  # (S, DK)
    cos = jnp.cos(idx[:, None] * angle[None, :])
    tril = jnp.tril(jnp.ones((slen, slen), dtype=bool))
    diff = idx[:, None] - idx[None, :]
    mask = jnp.where(tril[None], jnp.exp(diff[None] * decay[:, None, None]), 0.0)
    mask = mask / jnp.sqrt(jnp.sum(mask, axis=-1, keepdims=True))  # (H, S, S)
    return sin.astype(jnp.float32), cos.astype(jnp.float32), mask.astype(jnp.float32)


# ---------------- deterministic parameter init ----------------
def xavier_u(key, shape, gain):
    fan_out, fan_in = shape  # torch Linear weight is (out, in)
    limit = gain * math.sqrt(6.0 / (fan_in + fan_out))
    return jax.random.uniform(key, shape, jnp.float32, -limit, limit)


def init_params(key):
    keys = jax.random.split(key, 2 + L * 8)
    it = iter(keys)
    embed = jax.random.normal(next(it), (VOCAB, D), jnp.float32) * 0.02
    w_out = (jax.random.normal(next(it), (VOCAB, D), jnp.float32) * (D ** -0.5)).T
    ln_final = jnp.ones((D,), jnp.float32)
    layers = []
    for _ in range(L):
        ln1 = jnp.ones((D,), jnp.float32)
        wq = xavier_u(next(it), (D, D), 2 ** -2.5).T
        wk = xavier_u(next(it), (D, D), 2 ** -2.5).T
        wv = xavier_u(next(it), (DV, D), 2 ** -2.5).T
        wg = xavier_u(next(it), (DV, D), 2 ** -2.5).T
        wo = xavier_u(next(it), (D, DV), 2 ** -1.0).T
        ln2 = jnp.ones((D,), jnp.float32)
        lim = 1.0 / math.sqrt(D)
        wgate = jax.random.uniform(next(it), (FFN, D), jnp.float32, -lim, lim).T
        wfc1 = jax.random.uniform(next(it), (FFN, D), jnp.float32, -lim, lim).T
        limf = 1.0 / math.sqrt(FFN)
        wfc2 = jax.random.uniform(next(it), (D, FFN), jnp.float32, -limf, limf).T
        layers.append((ln1, wq, wk, wv, wg, wo, ln2, wgate, wfc1, wfc2))
    return embed, w_out, ln_final, layers


# ---------------- pure-JAX reference (PyTorch semantics) ----------------
def rotate_every_two(x):
    x1 = x[..., ::2]
    x2 = x[..., 1::2]
    return jnp.stack((-x2, x1), axis=-1).reshape(x.shape)


def reference_forward(tokens, embed, w_out, ln_final, layers, consts):
    sin, cos, mask = consts
    x = EMBED_SCALE * embed[tokens]                              # (B, S, D)
    for (ln1, wq, wk, wv, wg, wo, ln2, wgate, wfc1, wfc2) in layers:
        h = _rms(x) * ln1
        q = h @ wq
        k = (h @ wk) * SCALING
        v = h @ wv
        g = h @ wg
        qh = q.reshape(B, S, H, DK).transpose(0, 2, 1, 3)
        kh = k.reshape(B, S, H, DK).transpose(0, 2, 1, 3)
        vh = v.reshape(B, S, H, DH).transpose(0, 2, 1, 3)
        qr = qh * cos + rotate_every_two(qh) * sin
        kr = kh * cos + rotate_every_two(kh) * sin
        qk = jnp.einsum("bhqd,bhkd->bhqk", qr, kr) * mask[None]
        denom = jnp.clip(jnp.sum(jnp.abs(qk), -1, keepdims=True), 1.0, 5e4)
        o = jnp.einsum("bhqk,bhkd->bhqd", qk / denom, vh)
        o = _rms(o)
        o = o.transpose(0, 2, 1, 3).reshape(B, S, DV)
        o = jax.nn.silu(g) * o
        x = x + o @ wo
        h2 = _rms(x) * ln2
        y = (jax.nn.silu(h2 @ wfc1) * (h2 @ wgate)) @ wfc2
        x = x + y
    x = _rms(x) * ln_final
    return x @ w_out


if __name__ == "__main__":
    key = jax.random.PRNGKey(0)
    k_tok, k_par = jax.random.split(key)
    tokens = jax.random.randint(k_tok, (B, S), 0, VOCAB, dtype=jnp.int32)
    embed, w_out, ln_final, layers = init_params(k_par)
    consts = build_rel_pos(S)

    out = retnet_forward_pallas(tokens, embed, w_out, ln_final, layers, consts)
    out = jax.block_until_ready(out)

    ref = reference_forward(tokens, embed, w_out, ln_final, layers, consts)
    ref = jax.block_until_ready(ref)

    assert out.shape == (B, S, VOCAB)
    assert bool(jnp.all(jnp.isfinite(out)))
    # Kernel and reference both run default (MXU) matmul precision, so they
    # track each other closely; tolerance covers accumulation-order noise and
    # the approx reciprocal (mostly cancelled by the group norm).
    if not bool(jnp.allclose(out, ref, rtol=2e-2, atol=2e-2)):
        raise AssertionError("Pallas kernel output does not match JAX reference")

    print("KERNEL_OK")
</pallas_src>

<mosaic_0001>
module attributes {stable_mosaic.version = 11 : i64} {
  func.func @retnet_kernel(%arg0: memref<16x32xf32, #tpu.memory_space<vmem>>, %arg1: memref<64x128xf32, #tpu.memory_space<vmem>>, %arg2: memref<2x32x128xf32, #tpu.memory_space<vmem>>, %arg3: memref<2x32x32xf32, #tpu.memory_space<vmem>>, %arg4: memref<2x32x128xf32, #tpu.memory_space<vmem>>, %arg5: memref<2x64x32xf32, #tpu.memory_space<vmem>>, %arg6: memref<32x128xf32, #tpu.memory_space<vmem>>, %arg7: memref<16x128xf32, #tpu.memory_space<vmem>>) attributes {dimension_semantics = [], scalar_prefetch = 0 : i64, scratch_operands = 0 : i64, tpu.core_type = #tpu.core_type<tc>} {
    %c0 = arith.constant 0 : index
    %c0_0 = arith.constant 0 : index
    %0 = vector.load %arg0[%c0, %c0_0] : memref<16x32xf32, #tpu.memory_space<vmem>>, vector<16x32xf32>
    %c0_1 = arith.constant 0 : index
    %c0_2 = arith.constant 0 : index
    %1 = vector.load %arg1[%c0_1, %c0_2] : memref<64x128xf32, #tpu.memory_space<vmem>>, vector<16x128xf32>
    %c16 = arith.constant 16 : index
    %c0_3 = arith.constant 0 : index
    %2 = vector.load %arg1[%c16, %c0_3] : memref<64x128xf32, #tpu.memory_space<vmem>>, vector<16x128xf32>
    %c32 = arith.constant 32 : index
    %c0_4 = arith.constant 0 : index
    %3 = vector.load %arg1[%c32, %c0_4] : memref<64x128xf32, #tpu.memory_space<vmem>>, vector<16x128xf32>
    %c48 = arith.constant 48 : index
    %c0_5 = arith.constant 0 : index
    %4 = vector.load %arg1[%c48, %c0_5] : memref<64x128xf32, #tpu.memory_space<vmem>>, vector<16x128xf32>
    %5 = vector.extract_strided_slice %4 {offsets = [0, 0], sizes = [16, 16], strides = [1, 1]} : vector<16x128xf32> to vector<16x16xf32>
    %6 = vector.extract_strided_slice %4 {offsets = [0, 16], sizes = [16, 16], strides = [1, 1]} : vector<16x128xf32> to vector<16x16xf32>
    %7 = vector.extract_strided_slice %4 {offsets = [0, 32], sizes = [1, 32], strides = [1, 1]} : vector<16x128xf32> to vector<1x32xf32>
    %8 = arith.mulf %0, %0 : vector<16x32xf32>
    %cst = arith.constant dense<0.000000e+00> : vector<16xf32>
    %9 = vector.multi_reduction <add>, %8, %cst [1] : vector<16x32xf32> to vector<16xf32>
    %10 = vector.shape_cast %9 : vector<16xf32> to vector<16x1xf32>
    %cst_6 = arith.constant 3.200000e+01 : f32
    %11 = vector.broadcast %cst_6 : f32 to vector<16x1xf32>
    %12 = arith.divf %10, %11 : vector<16x1xf32>
    %cst_7 = arith.constant 9.99999997E-7 : f32
    %13 = vector.broadcast %cst_7 : f32 to vector<16x1xf32>
    %14 = arith.addf %12, %13 : vector<16x1xf32>
    %15 = math.rsqrt %14 : vector<16x1xf32>
    %16 = vector.broadcast %15 : vector<16x1xf32> to vector<16x32xf32>
    %17 = arith.mulf %0, %16 : vector<16x32xf32>
    %18 = vector.broadcast %7 : vector<1x32xf32> to vector<16x32xf32>
    %19 = arith.mulf %17, %18 : vector<16x32xf32>
    %c0_8 = arith.constant 0 : index
    %c0_9 = arith.constant 0 : index
    %c0_10 = arith.constant 0 : index
    %20 = vector.load %arg2[%c0_8, %c0_9, %c0_10] : memref<2x32x128xf32, #tpu.memory_space<vmem>>, vector<1x32x128xf32>
    %21 = vector.shape_cast %20 : vector<1x32x128xf32> to vector<32x128xf32>
    %cst_11 = arith.constant dense<0.000000e+00> : vector<16x128xf32>
    %22 = tpu.matmul %19, %21, %cst_11 {dimension_numbers = #tpu.dot_dimension_numbers<[1], [0], [0], [1], [0, 0, 1, 1], [], []>} : vector<16x32xf32>, vector<32x128xf32>, vector<16x128xf32> -> vector<16x128xf32>
    %23 = arith.mulf %22, %1 : vector<16x128xf32>
    %c127_i32 = arith.constant 127 : i32
    %24 = tpu.dynamic_rotate %22 by %c127_i32 dim 1 : vector<16x128xf32>, i32 -> vector<16x128xf32>
    %25 = arith.mulf %24, %2 : vector<16x128xf32>
    %26 = arith.addf %23, %25 : vector<16x128xf32>
    %c1_i32 = arith.constant 1 : i32
    %27 = tpu.dynamic_rotate %22 by %c1_i32 dim 1 : vector<16x128xf32>, i32 -> vector<16x128xf32>
    %28 = arith.mulf %27, %3 : vector<16x128xf32>
    %29 = arith.addf %26, %28 : vector<16x128xf32>
    %30 = vector.extract_strided_slice %22 {offsets = [0, 64], sizes = [16, 32], strides = [1, 1]} : vector<16x128xf32> to vector<16x32xf32>
    %31 = vector.extract_strided_slice %22 {offsets = [0, 96], sizes = [16, 32], strides = [1, 1]} : vector<16x128xf32> to vector<16x32xf32>
    %c0_12 = arith.constant 0 : index
    %c0_13 = arith.constant 0 : index
    %c0_14 = arith.constant 0 : index
    %32 = vector.load %arg3[%c0_12, %c0_13, %c0_14] : memref<2x32x32xf32, #tpu.memory_space<vmem>>, vector<1x32x32xf32>
    %33 = vector.shape_cast %32 : vector<1x32x32xf32> to vector<32x32xf32>
    %34 = vector.extract_strided_slice %29 {offsets = [0, 0], sizes = [16, 16], strides = [1, 1]} : vector<16x128xf32> to vector<16x16xf32>
    %35 = vector.extract_strided_slice %29 {offsets = [0, 32], sizes = [16, 16], strides = [1, 1]} : vector<16x128xf32> to vector<16x16xf32>
    %36 = vector.extract_strided_slice %30 {offsets = [0, 0], sizes = [16, 16], strides = [1, 1]} : vector<16x32xf32> to vector<16x16xf32>
    %cst_15 = arith.constant dense<0.000000e+00> : vector<16x16xf32>
    %37 = tpu.matmul %34, %35, %cst_15 {dimension_numbers = #tpu.dot_dimension_numbers<[1], [1], [0], [0], [0, 0, 1, 0], [], []>} : vector<16x16xf32>, vector<16x16xf32>, vector<16x16xf32> -> vector<16x16xf32>
    %38 = arith.mulf %37, %5 : vector<16x16xf32>
    %39 = math.absf %38 : vector<16x16xf32>
    %cst_16 = arith.constant dense<0.000000e+00> : vector<16xf32>
    %40 = vector.multi_reduction <add>, %39, %cst_16 [1] : vector<16x16xf32> to vector<16xf32>
    %41 = vector.shape_cast %40 : vector<16xf32> to vector<16x1xf32>
    %cst_17 = arith.constant 1.000000e+00 : f32
    %cst_18 = arith.constant 5.000000e+04 : f32
    %42 = vector.broadcast %cst_17 : f32 to vector<16x1xf32>
    %43 = arith.maximumf %42, %41 : vector<16x1xf32>
    %44 = vector.broadcast %cst_18 : f32 to vector<16x1xf32>
    %45 = arith.minimumf %44, %43 : vector<16x1xf32>
    %46 = tpu.reciprocal %45 {approx = true} : vector<16x1xf32> -> vector<16x1xf32>
    %47 = vector.broadcast %46 : vector<16x1xf32> to vector<16x16xf32>
    %48 = arith.mulf %38, %47 : vector<16x16xf32>
    %cst_19 = arith.constant dense<0.000000e+00> : vector<16x16xf32>
    %49 = tpu.matmul %48, %36, %cst_19 {dimension_numbers = #tpu.dot_dimension_numbers<[1], [0], [0], [1], [0, 0, 1, 1], [], []>} : vector<16x16xf32>, vector<16x16xf32>, vector<16x16xf32> -> vector<16x16xf32>
    %50 = vector.extract_strided_slice %31 {offsets = [0, 0], sizes = [16, 16], strides = [1, 1]} : vector<16x32xf32> to vector<16x16xf32>
    %51 = arith.negf %50 : vector<16x16xf32>
    %52 = math.exp %51 : vector<16x16xf32>
    %cst_20 = arith.constant 1.000000e+00 : f32
    %53 = vector.broadcast %cst_20 : f32 to vector<16x16xf32>
    %54 = arith.addf %53, %52 : vector<16x16xf32>
    %55 = arith.divf %53, %54 : vector<16x16xf32>
    %56 = arith.mulf %50, %55 : vector<16x16xf32>
    %57 = arith.mulf %49, %49 : vector<16x16xf32>
    %cst_21 = arith.constant dense<0.000000e+00> : vector<16xf32>
    %58 = vector.multi_reduction <add>, %57, %cst_21 [1] : vector<16x16xf32> to vector<16xf32>
    %59 = vector.shape_cast %58 : vector<16xf32> to vector<16x1xf32>
    %cst_22 = arith.constant 1.600000e+01 : f32
    %60 = vector.broadcast %cst_22 : f32 to vector<16x1xf32>
    %61 = arith.divf %59, %60 : vector<16x1xf32>
    %cst_23 = arith.constant 9.99999997E-7 : f32
    %62 = vector.broadcast %cst_23 : f32 to vector<16x1xf32>
    %63 = arith.addf %61, %62 : vector<16x1xf32>
    %64 = math.rsqrt %63 : vector<16x1xf32>
    %65 = vector.broadcast %64 : vector<16x1xf32> to vector<16x16xf32>
    %66 = arith.mulf %49, %65 : vector<16x16xf32>
    %67 = arith.mulf %56, %66 : vector<16x16xf32>
    %68 = vector.extract_strided_slice %33 {offsets = [0, 0], sizes = [16, 32], strides = [1, 1]} : vector<32x32xf32> to vector<16x32xf32>
    %cst_24 = arith.constant dense<0.000000e+00> : vector<16x32xf32>
    %69 = tpu.matmul %67, %68, %cst_24 {dimension_numbers = #tpu.dot_dimension_numbers<[1], [0], [0], [1], [0, 0, 1, 1], [], []>} : vector<16x16xf32>, vector<16x32xf32>, vector<16x32xf32> -> vector<16x32xf32>
    %70 = arith.addf %0, %69 : vector<16x32xf32>
    %71 = vector.extract_strided_slice %29 {offsets = [0, 16], sizes = [16, 16], strides = [1, 1]} : vector<16x128xf32> to vector<16x16xf32>
    %72 = vector.extract_strided_slice %29 {offsets = [0, 48], sizes = [16, 16], strides = [1, 1]} : vector<16x128xf32> to vector<16x16xf32>
    %73 = vector.extract_strided_slice %30 {offsets = [0, 16], sizes = [16, 16], strides = [1, 1]} : vector<16x32xf32> to vector<16x16xf32>
    %cst_25 = arith.constant dense<0.000000e+00> : vector<16x16xf32>
    %74 = tpu.matmul %71, %72, %cst_25 {dimension_numbers = #tpu.dot_dimension_numbers<[1], [1], [0], [0], [0, 0, 1, 0], [], []>} : vector<16x16xf32>, vector<16x16xf32>, vector<16x16xf32> -> vector<16x16xf32>
    %75 = arith.mulf %74, %6 : vector<16x16xf32>
    %76 = math.absf %75 : vector<16x16xf32>
    %cst_26 = arith.constant dense<0.000000e+00> : vector<16xf32>
    %77 = vector.multi_reduction <add>, %76, %cst_26 [1] : vector<16x16xf32> to vector<16xf32>
    %78 = vector.shape_cast %77 : vector<16xf32> to vector<16x1xf32>
    %cst_27 = arith.constant 1.000000e+00 : f32
    %cst_28 = arith.constant 5.000000e+04 : f32
    %79 = vector.broadcast %cst_27 : f32 to vector<16x1xf32>
    %80 = arith.maximumf %79, %78 : vector<16x1xf32>
    %81 = vector.broadcast %cst_28 : f32 to vector<16x1xf32>
    %82 = arith.minimumf %81, %80 : vector<16x1xf32>
    %83 = tpu.reciprocal %82 {approx = true} : vector<16x1xf32> -> vector<16x1xf32>
    %84 = vector.broadcast %83 : vector<16x1xf32> to vector<16x16xf32>
    %85 = arith.mulf %75, %84 : vector<16x16xf32>
    %cst_29 = arith.constant dense<0.000000e+00> : vector<16x16xf32>
    %86 = tpu.matmul %85, %73, %cst_29 {dimension_numbers = #tpu.dot_dimension_numbers<[1], [0], [0], [1], [0, 0, 1, 1], [], []>} : vector<16x16xf32>, vector<16x16xf32>, vector<16x16xf32> -> vector<16x16xf32>
    %87 = vector.extract_strided_slice %31 {offsets = [0, 16], sizes = [16, 16], strides = [1, 1]} : vector<16x32xf32> to vector<16x16xf32>
    %88 = arith.negf %87 : vector<16x16xf32>
    %89 = math.exp %88 : vector<16x16xf32>
    %cst_30 = arith.constant 1.000000e+00 : f32
    %90 = vector.broadcast %cst_30 : f32 to vector<16x16xf32>
    %91 = arith.addf %90, %89 : vector<16x16xf32>
    %92 = arith.divf %90, %91 : vector<16x16xf32>
    %93 = arith.mulf %87, %92 : vector<16x16xf32>
    %94 = arith.mulf %86, %86 : vector<16x16xf32>
    %cst_31 = arith.constant dense<0.000000e+00> : vector<16xf32>
    %95 = vector.multi_reduction <add>, %94, %cst_31 [1] : vector<16x16xf32> to vector<16xf32>
    %96 = vector.shape_cast %95 : vector<16xf32> to vector<16x1xf32>
    %cst_32 = arith.constant 1.600000e+01 : f32
    %97 = vector.broadcast %cst_32 : f32 to vector<16x1xf32>
    %98 = arith.divf %96, %97 : vector<16x1xf32>
    %cst_33 = arith.constant 9.99999997E-7 : f32
    %99 = vector.broadcast %cst_33 : f32 to vector<16x1xf32>
    %100 = arith.addf %98, %99 : vector<16x1xf32>
    %101 = math.rsqrt %100 : vector<16x1xf32>
    %102 = vector.broadcast %101 : vector<16x1xf32> to vector<16x16xf32>
    %103 = arith.mulf %86, %102 : vector<16x16xf32>
    %104 = arith.mulf %93, %103 : vector<16x16xf32>
    %105 = vector.extract_strided_slice %33 {offsets = [16, 0], sizes = [16, 32], strides = [1, 1]} : vector<32x32xf32> to vector<16x32xf32>
    %cst_34 = arith.constant dense<0.000000e+00> : vector<16x32xf32>
    %106 = tpu.matmul %104, %105, %cst_34 {dimension_numbers = #tpu.dot_dimension_numbers<[1], [0], [0], [1], [0, 0, 1, 1], [], []>} : vector<16x16xf32>, vector<16x32xf32>, vector<16x32xf32> -> vector<16x32xf32>
    %107 = arith.addf %70, %106 : vector<16x32xf32>
    %108 = vector.extract_strided_slice %4 {offsets = [2, 32], sizes = [1, 32], strides = [1, 1]} : vector<16x128xf32> to vector<1x32xf32>
    %109 = arith.mulf %107, %107 : vector<16x32xf32>
    %cst_35 = arith.constant dense<0.000000e+00> : vector<16xf32>
    %110 = vector.multi_reduction <add>, %109, %cst_35 [1] : vector<16x32xf32> to vector<16xf32>
    %111 = vector.shape_cast %110 : vector<16xf32> to vector<16x1xf32>
    %cst_36 = arith.constant 3.200000e+01 : f32
    %112 = vector.broadcast %cst_36 : f32 to vector<16x1xf32>
    %113 = arith.divf %111, %112 : vector<16x1xf32>
    %cst_37 = arith.constant 9.99999997E-7 : f32
    %114 = vector.broadcast %cst_37 : f32 to vector<16x1xf32>
    %115 = arith.addf %113, %114 : vector<16x1xf32>
    %116 = math.rsqrt %115 : vector<16x1xf32>
    %117 = vector.broadcast %116 : vector<16x1xf32> to vector<16x32xf32>
    %118 = arith.mulf %107, %117 : vector<16x32xf32>
    %119 = vector.broadcast %108 : vector<1x32xf32> to vector<16x32xf32>
    %120 = arith.mulf %118, %119 : vector<16x32xf32>
    %c0_38 = arith.constant 0 : index
    %c0_39 = arith.constant 0 : index
    %c0_40 = arith.constant 0 : index
    %121 = vector.load %arg4[%c0_38, %c0_39, %c0_40] : memref<2x32x128xf32, #tpu.memory_space<vmem>>, vector<1x32x128xf32>
    %122 = vector.shape_cast %121 : vector<1x32x128xf32> to vector<32x128xf32>
    %cst_41 = arith.constant dense<0.000000e+00> : vector<16x128xf32>
    %123 = tpu.matmul %120, %122, %cst_41 {dimension_numbers = #tpu.dot_dimension_numbers<[1], [0], [0], [1], [0, 0, 1, 1], [], []>} : vector<16x32xf32>, vector<32x128xf32>, vector<16x128xf32> -> vector<16x128xf32>
    %124 = vector.extract_strided_slice %123 {offsets = [0, 64], sizes = [16, 64], strides = [1, 1]} : vector<16x128xf32> to vector<16x64xf32>
    %125 = arith.negf %124 : vector<16x64xf32>
    %126 = math.exp %125 : vector<16x64xf32>
    %cst_42 = arith.constant 1.000000e+00 : f32
    %127 = vector.broadcast %cst_42 : f32 to vector<16x64xf32>
    %128 = arith.addf %127, %126 : vector<16x64xf32>
    %129 = arith.divf %127, %128 : vector<16x64xf32>
    %130 = arith.mulf %124, %129 : vector<16x64xf32>
    %131 = vector.extract_strided_slice %123 {offsets = [0, 0], sizes = [16, 64], strides = [1, 1]} : vector<16x128xf32> to vector<16x64xf32>
    %132 = arith.mulf %130, %131 : vector<16x64xf32>
    %c0_43 = arith.constant 0 : index
    %c0_44 = arith.constant 0 : index
    %c0_45 = arith.constant 0 : index
    %133 = vector.load %arg5[%c0_43, %c0_44, %c0_45] : memref<2x64x32xf32, #tpu.memory_space<vmem>>, vector<1x64x32xf32>
    %134 = vector.shape_cast %133 : vector<1x64x32xf32> to vector<64x32xf32>
    %cst_46 = arith.constant dense<0.000000e+00> : vector<16x32xf32>
    %135 = tpu.matmul %132, %134, %cst_46 {dimension_numbers = #tpu.dot_dimension_numbers<[1], [0], [0], [1], [0, 0, 1, 1], [], []>} : vector<16x64xf32>, vector<64x32xf32>, vector<16x32xf32> -> vector<16x32xf32>
    %136 = arith.addf %107, %135 : vector<16x32xf32>
    %137 = vector.extract_strided_slice %4 {offsets = [1, 32], sizes = [1, 32], strides = [1, 1]} : vector<16x128xf32> to vector<1x32xf32>
    %138 = arith.mulf %136, %136 : vector<16x32xf32>
    %cst_47 = arith.constant dense<0.000000e+00> : vector<16xf32>
    %139 = vector.multi_reduction <add>, %138, %cst_47 [1] : vector<16x32xf32> to vector<16xf32>
    %140 = vector.shape_cast %139 : vector<16xf32> to vector<16x1xf32>
    %cst_48 = arith.constant 3.200000e+01 : f32
    %141 = vector.broadcast %cst_48 : f32 to vector<16x1xf32>
    %142 = arith.divf %140, %141 : vector<16x1xf32>
    %cst_49 = arith.constant 9.99999997E-7 : f32
    %143 = vector.broadcast %cst_49 : f32 to vector<16x1xf32>
    %144 = arith.addf %142, %143 : vector<16x1xf32>
    %145 = math.rsqrt %144 : vector<16x1xf32>
    %146 = vector.broadcast %145 : vector<16x1xf32> to vector<16x32xf32>
    %147 = arith.mulf %136, %146 : vector<16x32xf32>
    %148 = vector.broadcast %137 : vector<1x32xf32> to vector<16x32xf32>
    %149 = arith.mulf %147, %148 : vector<16x32xf32>
    %c1 = arith.constant 1 : index
    %c0_50 = arith.constant 0 : index
    %c0_51 = arith.constant 0 : index
    %150 = vector.load %arg2[%c1, %c0_50, %c0_51] : memref<2x32x128xf32, #tpu.memory_space<vmem>>, vector<1x32x128xf32>
    %151 = vector.shape_cast %150 : vector<1x32x128xf32> to vector<32x128xf32>
    %cst_52 = arith.constant dense<0.000000e+00> : vector<16x128xf32>
    %152 = tpu.matmul %149, %151, %cst_52 {dimension_numbers = #tpu.dot_dimension_numbers<[1], [0], [0], [1], [0, 0, 1, 1], [], []>} : vector<16x32xf32>, vector<32x128xf32>, vector<16x128xf32> -> vector<16x128xf32>
    %153 = arith.mulf %152, %1 : vector<16x128xf32>
    %c127_i32_53 = arith.constant 127 : i32
    %154 = tpu.dynamic_rotate %152 by %c127_i32_53 dim 1 : vector<16x128xf32>, i32 -> vector<16x128xf32>
    %155 = arith.mulf %154, %2 : vector<16x128xf32>
    %156 = arith.addf %153, %155 : vector<16x128xf32>
    %c1_i32_54 = arith.constant 1 : i32
    %157 = tpu.dynamic_rotate %152 by %c1_i32_54 dim 1 : vector<16x128xf32>, i32 -> vector<16x128xf32>
    %158 = arith.mulf %157, %3 : vector<16x128xf32>
    %159 = arith.addf %156, %158 : vector<16x128xf32>
    %160 = vector.extract_strided_slice %152 {offsets = [0, 64], sizes = [16, 32], strides = [1, 1]} : vector<16x128xf32> to vector<16x32xf32>
    %161 = vector.extract_strided_slice %152 {offsets = [0, 96], sizes = [16, 32], strides = [1, 1]} : vector<16x128xf32> to vector<16x32xf32>
    %c1_55 = arith.constant 1 : index
    %c0_56 = arith.constant 0 : index
    %c0_57 = arith.constant 0 : index
    %162 = vector.load %arg3[%c1_55, %c0_56, %c0_57] : memref<2x32x32xf32, #tpu.memory_space<vmem>>, vector<1x32x32xf32>
    %163 = vector.shape_cast %162 : vector<1x32x32xf32> to vector<32x32xf32>
    %164 = vector.extract_strided_slice %159 {offsets = [0, 0], sizes = [16, 16], strides = [1, 1]} : vector<16x128xf32> to vector<16x16xf32>
    %165 = vector.extract_strided_slice %159 {offsets = [0, 32], sizes = [16, 16], strides = [1, 1]} : vector<16x128xf32> to vector<16x16xf32>
    %166 = vector.extract_strided_slice %160 {offsets = [0, 0], sizes = [16, 16], strides = [1, 1]} : vector<16x32xf32> to vector<16x16xf32>
    %cst_58 = arith.constant dense<0.000000e+00> : vector<16x16xf32>
    %167 = tpu.matmul %164, %165, %cst_58 {dimension_numbers = #tpu.dot_dimension_numbers<[1], [1], [0], [0], [0, 0, 1, 0], [], []>} : vector<16x16xf32>, vector<16x16xf32>, vector<16x16xf32> -> vector<16x16xf32>
    %168 = arith.mulf %167, %5 : vector<16x16xf32>
    %169 = math.absf %168 : vector<16x16xf32>
    %cst_59 = arith.constant dense<0.000000e+00> : vector<16xf32>
    %170 = vector.multi_reduction <add>, %169, %cst_59 [1] : vector<16x16xf32> to vector<16xf32>
    %171 = vector.shape_cast %170 : vector<16xf32> to vector<16x1xf32>
    %cst_60 = arith.constant 1.000000e+00 : f32
    %cst_61 = arith.constant 5.000000e+04 : f32
    %172 = vector.broadcast %cst_60 : f32 to vector<16x1xf32>
    %173 = arith.maximumf %172, %171 : vector<16x1xf32>
    %174 = vector.broadcast %cst_61 : f32 to vector<16x1xf32>
    %175 = arith.minimumf %174, %173 : vector<16x1xf32>
    %176 = tpu.reciprocal %175 {approx = true} : vector<16x1xf32> -> vector<16x1xf32>
    %177 = vector.broadcast %176 : vector<16x1xf32> to vector<16x16xf32>
    %178 = arith.mulf %168, %177 : vector<16x16xf32>
    %cst_62 = arith.constant dense<0.000000e+00> : vector<16x16xf32>
    %179 = tpu.matmul %178, %166, %cst_62 {dimension_numbers = #tpu.dot_dimension_numbers<[1], [0], [0], [1], [0, 0, 1, 1], [], []>} : vector<16x16xf32>, vector<16x16xf32>, vector<16x16xf32> -> vector<16x16xf32>
    %180 = vector.extract_strided_slice %161 {offsets = [0, 0], sizes = [16, 16], strides = [1, 1]} : vector<16x32xf32> to vector<16x16xf32>
    %181 = arith.negf %180 : vector<16x16xf32>
    %182 = math.exp %181 : vector<16x16xf32>
    %cst_63 = arith.constant 1.000000e+00 : f32
    %183 = vector.broadcast %cst_63 : f32 to vector<16x16xf32>
    %184 = arith.addf %183, %182 : vector<16x16xf32>
    %185 = arith.divf %183, %184 : vector<16x16xf32>
    %186 = arith.mulf %180, %185 : vector<16x16xf32>
    %187 = arith.mulf %179, %179 : vector<16x16xf32>
    %cst_64 = arith.constant dense<0.000000e+00> : vector<16xf32>
    %188 = vector.multi_reduction <add>, %187, %cst_64 [1] : vector<16x16xf32> to vector<16xf32>
    %189 = vector.shape_cast %188 : vector<16xf32> to vector<16x1xf32>
    %cst_65 = arith.constant 1.600000e+01 : f32
    %190 = vector.broadcast %cst_65 : f32 to vector<16x1xf32>
    %191 = arith.divf %189, %190 : vector<16x1xf32>
    %cst_66 = arith.constant 9.99999997E-7 : f32
    %192 = vector.broadcast %cst_66 : f32 to vector<16x1xf32>
    %193 = arith.addf %191, %192 : vector<16x1xf32>
    %194 = math.rsqrt %193 : vector<16x1xf32>
    %195 = vector.broadcast %194 : vector<16x1xf32> to vector<16x16xf32>
    %196 = arith.mulf %179, %195 : vector<16x16xf32>
    %197 = arith.mulf %186, %196 : vector<16x16xf32>
    %198 = vector.extract_strided_slice %163 {offsets = [0, 0], sizes = [16, 32], strides = [1, 1]} : vector<32x32xf32> to vector<16x32xf32>
    %cst_67 = arith.constant dense<0.000000e+00> : vector<16x32xf32>
    %199 = tpu.matmul %197, %198, %cst_67 {dimension_numbers = #tpu.dot_dimension_numbers<[1], [0], [0], [1], [0, 0, 1, 1], [], []>} : vector<16x16xf32>, vector<16x32xf32>, vector<16x32xf32> -> vector<16x32xf32>
    %200 = arith.addf %136, %199 : vector<16x32xf32>
    %201 = vector.extract_strided_slice %159 {offsets = [0, 16], sizes = [16, 16], strides = [1, 1]} : vector<16x128xf32> to vector<16x16xf32>
    %202 = vector.extract_strided_slice %159 {offsets = [0, 48], sizes = [16, 16], strides = [1, 1]} : vector<16x128xf32> to vector<16x16xf32>
    %203 = vector.extract_strided_slice %160 {offsets = [0, 16], sizes = [16, 16], strides = [1, 1]} : vector<16x32xf32> to vector<16x16xf32>
    %cst_68 = arith.constant dense<0.000000e+00> : vector<16x16xf32>
    %204 = tpu.matmul %201, %202, %cst_68 {dimension_numbers = #tpu.dot_dimension_numbers<[1], [1], [0], [0], [0, 0, 1, 0], [], []>} : vector<16x16xf32>, vector<16x16xf32>, vector<16x16xf32> -> vector<16x16xf32>
    %205 = arith.mulf %204, %6 : vector<16x16xf32>
    %206 = math.absf %205 : vector<16x16xf32>
    %cst_69 = arith.constant dense<0.000000e+00> : vector<16xf32>
    %207 = vector.multi_reduction <add>, %206, %cst_69 [1] : vector<16x16xf32> to vector<16xf32>
    %208 = vector.shape_cast %207 : vector<16xf32> to vector<16x1xf32>
    %cst_70 = arith.constant 1.000000e+00 : f32
    %cst_71 = arith.constant 5.000000e+04 : f32
    %209 = vector.broadcast %cst_70 : f32 to vector<16x1xf32>
    %210 = arith.maximumf %209, %208 : vector<16x1xf32>
    %211 = vector.broadcast %cst_71 : f32 to vector<16x1xf32>
    %212 = arith.minimumf %211, %210 : vector<16x1xf32>
    %213 = tpu.reciprocal %212 {approx = true} : vector<16x1xf32> -> vector<16x1xf32>
    %214 = vector.broadcast %213 : vector<16x1xf32> to vector<16x16xf32>
    %215 = arith.mulf %205, %214 : vector<16x16xf32>
    %cst_72 = arith.constant dense<0.000000e+00> : vector<16x16xf32>
    %216 = tpu.matmul %215, %203, %cst_72 {dimension_numbers = #tpu.dot_dimension_numbers<[1], [0], [0], [1], [0, 0, 1, 1], [], []>} : vector<16x16xf32>, vector<16x16xf32>, vector<16x16xf32> -> vector<16x16xf32>
    %217 = vector.extract_strided_slice %161 {offsets = [0, 16], sizes = [16, 16], strides = [1, 1]} : vector<16x32xf32> to vector<16x16xf32>
    %218 = arith.negf %217 : vector<16x16xf32>
    %219 = math.exp %218 : vector<16x16xf32>
    %cst_73 = arith.constant 1.000000e+00 : f32
    %220 = vector.broadcast %cst_73 : f32 to vector<16x16xf32>
    %221 = arith.addf %220, %219 : vector<16x16xf32>
    %222 = arith.divf %220, %221 : vector<16x16xf32>
    %223 = arith.mulf %217, %222 : vector<16x16xf32>
    %224 = arith.mulf %216, %216 : vector<16x16xf32>
    %cst_74 = arith.constant dense<0.000000e+00> : vector<16xf32>
    %225 = vector.multi_reduction <add>, %224, %cst_74 [1] : vector<16x16xf32> to vector<16xf32>
    %226 = vector.shape_cast %225 : vector<16xf32> to vector<16x1xf32>
    %cst_75 = arith.constant 1.600000e+01 : f32
    %227 = vector.broadcast %cst_75 : f32 to vector<16x1xf32>
    %228 = arith.divf %226, %227 : vector<16x1xf32>
    %cst_76 = arith.constant 9.99999997E-7 : f32
    %229 = vector.broadcast %cst_76 : f32 to vector<16x1xf32>
    %230 = arith.addf %228, %229 : vector<16x1xf32>
    %231 = math.rsqrt %230 : vector<16x1xf32>
    %232 = vector.broadcast %231 : vector<16x1xf32> to vector<16x16xf32>
    %233 = arith.mulf %216, %232 : vector<16x16xf32>
    %234 = arith.mulf %223, %233 : vector<16x16xf32>
    %235 = vector.extract_strided_slice %163 {offsets = [16, 0], sizes = [16, 32], strides = [1, 1]} : vector<32x32xf32> to vector<16x32xf32>
    %cst_77 = arith.constant dense<0.000000e+00> : vector<16x32xf32>
    %236 = tpu.matmul %234, %235, %cst_77 {dimension_numbers = #tpu.dot_dimension_numbers<[1], [0], [0], [1], [0, 0, 1, 1], [], []>} : vector<16x16xf32>, vector<16x32xf32>, vector<16x32xf32> -> vector<16x32xf32>
    %237 = arith.addf %200, %236 : vector<16x32xf32>
    %238 = vector.extract_strided_slice %4 {offsets = [3, 32], sizes = [1, 32], strides = [1, 1]} : vector<16x128xf32> to vector<1x32xf32>
    %239 = arith.mulf %237, %237 : vector<16x32xf32>
    %cst_78 = arith.constant dense<0.000000e+00> : vector<16xf32>
    %240 = vector.multi_reduction <add>, %239, %cst_78 [1] : vector<16x32xf32> to vector<16xf32>
    %241 = vector.shape_cast %240 : vector<16xf32> to vector<16x1xf32>
    %cst_79 = arith.constant 3.200000e+01 : f32
    %242 = vector.broadcast %cst_79 : f32 to vector<16x1xf32>
    %243 = arith.divf %241, %242 : vector<16x1xf32>
    %cst_80 = arith.constant 9.99999997E-7 : f32
    %244 = vector.broadcast %cst_80 : f32 to vector<16x1xf32>
    %245 = arith.addf %243, %244 : vector<16x1xf32>
    %246 = math.rsqrt %245 : vector<16x1xf32>
    %247 = vector.broadcast %246 : vector<16x1xf32> to vector<16x32xf32>
    %248 = arith.mulf %237, %247 : vector<16x32xf32>
    %249 = vector.broadcast %238 : vector<1x32xf32> to vector<16x32xf32>
    %250 = arith.mulf %248, %249 : vector<16x32xf32>
    %c1_81 = arith.constant 1 : index
    %c0_82 = arith.constant 0 : index
    %c0_83 = arith.constant 0 : index
    %251 = vector.load %arg4[%c1_81, %c0_82, %c0_83] : memref<2x32x128xf32, #tpu.memory_space<vmem>>, vector<1x32x128xf32>
    %252 = vector.shape_cast %251 : vector<1x32x128xf32> to vector<32x128xf32>
    %cst_84 = arith.constant dense<0.000000e+00> : vector<16x128xf32>
    %253 = tpu.matmul %250, %252, %cst_84 {dimension_numbers = #tpu.dot_dimension_numbers<[1], [0], [0], [1], [0, 0, 1, 1], [], []>} : vector<16x32xf32>, vector<32x128xf32>, vector<16x128xf32> -> vector<16x128xf32>
    %254 = vector.extract_strided_slice %253 {offsets = [0, 64], sizes = [16, 64], strides = [1, 1]} : vector<16x128xf32> to vector<16x64xf32>
    %255 = arith.negf %254 : vector<16x64xf32>
    %256 = math.exp %255 : vector<16x64xf32>
    %cst_85 = arith.constant 1.000000e+00 : f32
    %257 = vector.broadcast %cst_85 : f32 to vector<16x64xf32>
    %258 = arith.addf %257, %256 : vector<16x64xf32>
    %259 = arith.divf %257, %258 : vector<16x64xf32>
    %260 = arith.mulf %254, %259 : vector<16x64xf32>
    %261 = vector.extract_strided_slice %253 {offsets = [0, 0], sizes = [16, 64], strides = [1, 1]} : vector<16x128xf32> to vector<16x64xf32>
    %262 = arith.mulf %260, %261 : vector<16x64xf32>
    %c1_86 = arith.constant 1 : index
    %c0_87 = arith.constant 0 : index
    %c0_88 = arith.constant 0 : index
    %263 = vector.load %arg5[%c1_86, %c0_87, %c0_88] : memref<2x64x32xf32, #tpu.memory_space<vmem>>, vector<1x64x32xf32>
    %264 = vector.shape_cast %263 : vector<1x64x32xf32> to vector<64x32xf32>
    %cst_89 = arith.constant dense<0.000000e+00> : vector<16x32xf32>
    %265 = tpu.matmul %262, %264, %cst_89 {dimension_numbers = #tpu.dot_dimension_numbers<[1], [0], [0], [1], [0, 0, 1, 1], [], []>} : vector<16x64xf32>, vector<64x32xf32>, vector<16x32xf32> -> vector<16x32xf32>
    %266 = arith.addf %237, %265 : vector<16x32xf32>
    %267 = vector.extract_strided_slice %4 {offsets = [4, 32], sizes = [1, 32], strides = [1, 1]} : vector<16x128xf32> to vector<1x32xf32>
    %268 = arith.mulf %266, %266 : vector<16x32xf32>
    %cst_90 = arith.constant dense<0.000000e+00> : vector<16xf32>
    %269 = vector.multi_reduction <add>, %268, %cst_90 [1] : vector<16x32xf32> to vector<16xf32>
    %270 = vector.shape_cast %269 : vector<16xf32> to vector<16x1xf32>
    %cst_91 = arith.constant 3.200000e+01 : f32
    %271 = vector.broadcast %cst_91 : f32 to vector<16x1xf32>
    %272 = arith.divf %270, %271 : vector<16x1xf32>
    %cst_92 = arith.constant 9.99999997E-7 : f32
    %273 = vector.broadcast %cst_92 : f32 to vector<16x1xf32>
    %274 = arith.addf %272, %273 : vector<16x1xf32>
    %275 = math.rsqrt %274 : vector<16x1xf32>
    %276 = vector.broadcast %275 : vector<16x1xf32> to vector<16x32xf32>
    %277 = arith.mulf %266, %276 : vector<16x32xf32>
    %278 = vector.broadcast %267 : vector<1x32xf32> to vector<16x32xf32>
    %279 = arith.mulf %277, %278 : vector<16x32xf32>
    %c0_93 = arith.constant 0 : index
    %c0_94 = arith.constant 0 : index
    %280 = vector.load %arg6[%c0_93, %c0_94] : memref<32x128xf32, #tpu.memory_space<vmem>>, vector<32x128xf32>
    %cst_95 = arith.constant dense<0.000000e+00> : vector<16x128xf32>
    %281 = tpu.matmul %279, %280, %cst_95 {dimension_numbers = #tpu.dot_dimension_numbers<[1], [0], [0], [1], [0, 0, 1, 1], [], []>} : vector<16x32xf32>, vector<32x128xf32>, vector<16x128xf32> -> vector<16x128xf32>
    %c0_96 = arith.constant 0 : index
    %c0_97 = arith.constant 0 : index
    %282 = vector.load %arg7[%c0_96, %c0_97] : memref<16x128xf32, #tpu.memory_space<vmem>>, vector<16x128xf32>
    tpu.vector_store %arg7[%c0_96, %c0_97], %281 {strides = array<i32>} : memref<16x128xf32, #tpu.memory_space<vmem>>, vector<16x128xf32>,
    return
  }
}

</mosaic_0001>

<bundles_post_ra>
// kernel: tile.18
= control target key start
LH: loop header
LB: loop body
LE: loop exit
PB: predicated region body
PF: predicated region fallthrough
CT: control target
= control target key end

     0   :  { %s154_s0 = inlined_call_operand.vmem [shape: f32[8,16], index: 0, kind: input, shape index: {}]   ;;  %s155_s1 = inlined_call_operand.vmem [shape: f32[2,8,2,16], index: 1, kind: output, shape index: {}]  }
   0x1   :  { %v4_v0 = vld [vmem:[%s154_s0] ss:$0 sm:$0xff]  ;;  %v51_v1 = vld [vmem:[%s154_s0 + $0x1] ss:$0 sm:$0xff]  ;;  %v54_v2 = vld [vmem:[%s154_s0 + $0x2] ss:$0 sm:$0xff] }
   0x2   :  { %5 = vst [vmem:[%s155_s1] sm:$0x3] %v4_v0  ;;  %50 = vst [vmem:[%s155_s1 + $0x10] sm:$0x3] %v4_v0  ;;  %v57_v3 = vld [vmem:[%s154_s0 + $0x3] ss:$0 sm:$0xff] }
   0x3   :  { %52 = vst [vmem:[%s155_s1 + $0x2] sm:$0x3] %v51_v1  ;;  %53 = vst [vmem:[%s155_s1 + $0x12] sm:$0x3] %v51_v1  ;;  %v60_v4 = vld [vmem:[%s154_s0 + $0x4] ss:$0 sm:$0xff] }
   0x4   :  { %55 = vst [vmem:[%s155_s1 + $0x4] sm:$0x3] %v54_v2  ;;  %56 = vst [vmem:[%s155_s1 + $0x14] sm:$0x3] %v54_v2  ;;  %v63_v5 = vld [vmem:[%s154_s0 + $0x5] ss:$0 sm:$0xff] }
   0x5   :  { %58 = vst [vmem:[%s155_s1 + $0x6] sm:$0x3] %v57_v3  ;;  %59 = vst [vmem:[%s155_s1 + $0x16] sm:$0x3] %v57_v3  ;;  %v66_v6 = vld [vmem:[%s154_s0 + $0x6] ss:$0 sm:$0xff] }
   0x6   :  { %61 = vst [vmem:[%s155_s1 + $0x8] sm:$0x3] %v60_v4  ;;  %62 = vst [vmem:[%s155_s1 + $0x18] sm:$0x3] %v60_v4  ;;  %v69_v7 = vld [vmem:[%s154_s0 + $0x7] ss:$0 sm:$0xff] }
   0x7   :  { %64 = vst [vmem:[%s155_s1 + $0xa] sm:$0x3] %v63_v5  ;;  %65 = vst [vmem:[%s155_s1 + $0x1a] sm:$0x3] %v63_v5 }
   0x8   :  { %67 = vst [vmem:[%s155_s1 + $0xc] sm:$0x3] %v66_v6  ;;  %68 = vst [vmem:[%s155_s1 + $0x1c] sm:$0x3] %v66_v6 }
   0x9   :  { %70 = vst [vmem:[%s155_s1 + $0xe] sm:$0x3] %v69_v7  ;;  %71 = vst [vmem:[%s155_s1 + $0x1e] sm:$0x3] %v69_v7 }

// kernel: tile.19
= control target key start
LH: loop header
LB: loop body
LE: loop exit
PB: predicated region body
PF: predicated region fallthrough
CT: control target
= control target key end

     0   :  { %vm82_vm0 = vcmask 1047556   ;;  %vm84_vm1 = vcmask 130048   ;;  %vm103_vm2 = vcmask 261248   ;;  %s225_s0 = inlined_call_operand.vmem [shape: f32[2,8,2,16], index: 0, kind: input, shape index: {}]   ;;  %s226_s1 = inlined_call_operand.vmem [shape: f32[16,32], index: 1, kind: output, shape index: {}]  }
   0x1   :  { %v138_v0 = vld [vmem:[%s225_s0 + $0xe] sm:$0x3]  ;;  %v139_v1 = vld [vmem:[%s225_s0 + $0xc] sm:$0x3]  ;;  %v140_v2 = vld [vmem:[%s225_s0 + $0xa] sm:$0x3] }
   0x2   :  { %48 = vst [vmem:[#allocation0 + $0x38] sm:$0x3] %v138_v0  ;;  %53 = vst [vmem:[#allocation0 + $0x30] sm:$0x3] %v139_v1  ;;  %v141_v3 = vld [vmem:[%s225_s0 + $0x8] sm:$0x3] }
   0x3   :  { %58 = vst [vmem:[#allocation0 + $0x28] sm:$0x3] %v140_v2  ;;  %v142_v4 = vld [vmem:[%s225_s0 + $0x6] sm:$0x3]  ;;  %v143_v5 = vld [vmem:[%s225_s0 + $0x4] sm:$0x3] }
   0x4   :  { %63 = vst [vmem:[#allocation0 + $0x20] sm:$0x3] %v141_v3  ;;  %68 = vst [vmem:[#allocation0 + $0x18] sm:$0x3] %v142_v4  ;;  %v144_v6 = vld [vmem:[%s225_s0 + $0x2] sm:$0x3] }
   0x5   :  { %73 = vst [vmem:[#allocation0 + $0x10] sm:$0x3] %v143_v5  ;;  %v78_v7 = vld [vmem:[%s225_s0] sm:$0x3]  ;;  %77 = vst [vmem:[#allocation0 + $0x8] sm:$0x3] %v144_v6 }
   0x6   :  { %79 = vst [vmem:[#allocation0] sm:$0x3] %v78_v7  ;;  %v130_v8 = vld [vmem:[%s225_s0 + $0x1e] sm:$0x3]  ;;  %v131_v9 = vld [vmem:[%s225_s0 + $0x1c] sm:$0x3] }
   0x7   :  { %v132_v10 = vld [vmem:[%s225_s0 + $0x1a] sm:$0x3]  ;;  %8 = vst [vmem:[#allocation0 + $0x78] sm:$0x3] %v130_v8  ;;  %13 = vst [vmem:[#allocation0 + $0x70] sm:$0x3] %v131_v9 }
   0x8   :  { %18 = vst [vmem:[#allocation0 + $0x68] sm:$0x3] %v132_v10  ;;  %v133_v11 = vld [vmem:[%s225_s0 + $0x18] sm:$0x3]  ;;  %v134_v12 = vld [vmem:[%s225_s0 + $0x16] sm:$0x3] }
   0x9   :  { %v135_v13 = vld [vmem:[%s225_s0 + $0x14] sm:$0x3]  ;;  %23 = vst [vmem:[#allocation0 + $0x60] sm:$0x3] %v133_v11  ;;  %28 = vst [vmem:[#allocation0 + $0x58] sm:$0x3] %v134_v12 }
   0xa   :  { %33 = vst [vmem:[#allocation0 + $0x50] sm:$0x3] %v135_v13  ;;  %v136_v14 = vld [vmem:[%s225_s0 + $0x12] sm:$0x3]  ;;  %v137_v15 = vld [vmem:[%s225_s0 + $0x10] sm:$0x3] }
   0xb   :  { %38 = vst [vmem:[#allocation0 + $0x48] sm:$0x3] %v136_v14  ;;  %43 = vst [vmem:[#allocation0 + $0x40] sm:$0x3] %v137_v15  ;;  %s148_s0 = smov 16  }
   0xc   :  { %v98_v16 = vld [vmem:[#allocation0 + $0x1] ss:$8 sm:$0xf0]   ;;  %v81_v17 = vld [vmem:[#allocation0] ss:$8 sm:$0xf0]  }
   0xd   :  { %v96_v18 = vld [vmem:[#allocation0 + $0x1] ss:$8 sm:$0xf]   ;;  %v80_v19 = vld [vmem:[#allocation0] ss:$8 sm:$0xf]  }
   0xe   :  { %v100_v20 = vsel %vm82_vm0, %v98_v16, %v96_v18  ;;  %v83_v21 = vsel %vm82_vm0, %v81_v17, %v80_v19 }
   0xf   :  { %101 = vrot.lane.b32.xlu0 %v100_v20, %s148_s0  ;;  %85 = vst.msk [vmem:[%s226_s1] sm:$0xff] %vm84_vm1, %v83_v21  }
  0x10   :  { %v108_v22 = vld [vmem:[#allocation0 + $0x41] ss:$8 sm:$0xf0]   ;;  %v89_v23 = vld [vmem:[#allocation0 + $0x40] ss:$8 sm:$0xf0]  }
  0x12   :  { %v106_v24 = vld [vmem:[#allocation0 + $0x41] ss:$8 sm:$0xf]   ;;  %v87_v25 = vld [vmem:[#allocation0 + $0x40] ss:$8 sm:$0xf]  }
  0x13   :  { %v110_v26 = vsel %vm82_vm0, %v108_v22, %v106_v24  ;;  %v91_v27 = vsel %vm82_vm0, %v89_v23, %v87_v25 }
  0x14   :  { %145 = vst.msk [vmem:[%s226_s1 + $0x8] sm:$0xff] %vm84_vm1, %v91_v27   ;;  %111 = vrot.lane.b32.xlu0 %v110_v26, %s148_s0 }
  0x81   :  { %v102_v28 = vpop.permute.xlu0 %101  }
  0x82   :  { %104 = vst.msk [vmem:[%s226_s1] sm:$0xff] %vm103_vm2, %v102_v28  }
  0x86   :  { %v112_v29 = vpop.permute.xlu0 %111  }
  0x87   :  { %146 = vst.msk [vmem:[%s226_s1 + $0x8] sm:$0xff] %vm103_vm2, %v112_v29  }

// kernel: retnet_forward_pallas.1
= control target key start
LH: loop header
LB: loop body
LE: loop exit
PB: predicated region body
PF: predicated region fallthrough
CT: control target
= control target key end

     0   :  { %v54_v0 = vlaneseq  ;;  %vm38_vm0 = vcmask 261120   ;;  %s2780_s15 = smov 127   ;;  %s2781_s16 = smov 1   ;;  %vm177_vm1 = vcmask 130048   ;;  %vm962_vm3 = vcmask 523264   ;;  %s3288_s0 = inlined_call_operand.vmem [shape: f32[16,32], index: 0, kind: input, shape index: {}]   ;;  %s3289_s1 = inlined_call_operand.vmem [shape: f32[64,128], index: 1, kind: input, shape index: {}]   ;;  %s3290_s2 = inlined_call_operand.vmem [shape: f32[2,32,128], index: 2, kind: input, shape index: {}]   ;;  %s3291_s3 = inlined_call_operand.vmem [shape: f32[2,32,32], index: 3, kind: input, shape index: {}]   ;;  %s3292_s4 = inlined_call_operand.vmem [shape: f32[2,32,128], index: 4, kind: input, shape index: {}]   ;;  %s3293_s5 = inlined_call_operand.vmem [shape: f32[2,64,32], index: 5, kind: input, shape index: {}]   ;;  %s3294_s6 = inlined_call_operand.vmem [shape: f32[32,128], index: 6, kind: input, shape index: {}]   ;;  %s3295_s7 = inlined_call_operand.vmem [shape: f32[16,128], index: 7, kind: output, shape index: {}]  }
   0x1   :  { %v2831_v1 = vld [vmem:[%s3288_s0] sm:$0xff]  ;;  %v2836_v2 = vld [vmem:[%s3288_s0 + $0x8] sm:$0xff]  ;;  %v2847_v6 = vld [vmem:[%s3289_s1 + $0x30] sm:$0xff]  ;;  %s2779_s0 = smov 96   ;;  %s2782_s8 = smov 64  }
   0x2   :  { %v36_v3 = vmul.f32 %v2831_v1, %v2831_v1  ;;  %v37_v4 = vmul.f32 %v2836_v2, %v2836_v2  ;;  %v2842_v5 = vshrl.u32 %v54_v0, 7  ;;  %v64_v11 = vld [vmem:[%s3290_s2] sm:$0xff]  ;;  %v65_v12 = vld [vmem:[%s3290_s2 + $0x8] sm:$0xff]  ;;  %v66_v14 = vld [vmem:[%s3290_s2 + $0x10] sm:$0xff]  ;;  %s2783_s9 = smov 80   ;;  %s2784_s10 = smov 112  }
   0x3   :  { %v2509_v13 = vpack.c.bf16 %v65_v12, %v64_v11  ;;  %v67_v15 = vld [vmem:[%s3290_s2 + $0x18] sm:$0xff]  ;;  %v2889_v33 = vld [vmem:[%s3289_s1 + $0x10] sm:$0xff]  ;;  %v2894_v34 = vld [vmem:[%s3289_s1] sm:$0xff]  ;;  %s2785_s17 = smov 48   ;;  %s2786_s18 = smov 32  }
   0x4   :  { %v39_v7 = vsel %vm38_vm0, %v36_v3, 0.0  ;;  %v56_v8 = vsub.s32 0, %v2842_v5  ;;  %v42_v9 = vsel %vm38_vm0, %v37_v4, 0.0  ;;  %v2513_v16 = vpack.c.bf16 %v67_v15, %v66_v14  ;;  %v2900_v37 = vld [vmem:[%s3289_s1 + $0x18] sm:$0xff]  ;;  %v2905_v39 = vld [vmem:[%s3289_s1 + $0x20] sm:$0xff]  ;;  %v2912_v41 = vld [vmem:[%s3289_s1 + $0x8] sm:$0xff] }
   0x5   :  { %40 = vadd.xlane.f32.xlu0 %v39_v7  ;;  %2510 = vmatprep.subr.bf16.mxu0 %v2509_v13  ;;  %v2919_v46 = vld [vmem:[%s3289_s1 + $0x28] sm:$0xff]  ;;  %vm2928_vm2 = vmpackc.low %vm177_vm1, %vm177_vm1  ;;  %v2940_v59 = vld [vmem:[%s3289_s1 + $0x38] sm:$0xff]  ;;  %s2787_s23 = smov 16  }
   0x6   :  { %v57_v10 = vrot.slane %v2847_v6, %v56_v8  ;;  %2512 = vmatpush3.bf16.msra.mxu0 %v2509_v13 }
   0x7   :  { %2514 = vmatprep.subr.bf16.mxu0 %v2513_v16 }
   0x8   :  { %59 = vrot.lane.b32.xlu1 %v57_v10, %s2779_s0 }
   0x9   :  { %43 = vadd.xlane.f32.xlu0 %v42_v9 }
   0xa   :  { %2516 = vmatpush3.bf16.msra.mxu0 %v2513_v16 }
  0x7a   :  { %v60_v24 = vpop.permute.xlu1 %59 }
  0x92   :  { %v41_v17 = vpop.xlane.xlu0 %40 }
  0x93   :  { %v46_v18 = vmul.f32 0.03125, %v41_v17 }
  0x95   :  { %v48_v19 = vadd.f32 1e-06, %v46_v18 }
  0x96   :  { %v44_v20 = vpop.xlane.xlu0 %43 }
  0x97   :  { %2694 = vrsqrt.f32 %v48_v19  ;;  %v47_v21 = vmul.f32 0.03125, %v44_v20 }
  0x99   :  { %v49_v22 = vadd.f32 1e-06, %v47_v21 }
  0x9b   :  { %2696 = vrsqrt.f32 %v49_v22 }
  0xa1   :  { %v2695_v23 = vpop.eup %2694 }
  0xa2   :  { %v52_v25 = vmul.f32 %v2695_v23, %v2831_v1 }
  0xa4   :  { %v62_v26 = vmul.f32 %v60_v24, %v52_v25 }
  0xa5   :  { %v2697_v27 = vpop.eup %2696 }
  0xa6   :  { %v53_v28 = vmul.f32 %v2697_v27, %v2836_v2  ;;  %2340 = vmatprep.mubr.msk.f32.mxu0 %vm38_vm0, %v62_v26 }
  0xa8   :  { %v63_v29 = vmul.f32 %v60_v24, %v53_v28 }
  0xaa   :  { %2341 = vmatmul.mubr.msk.f32.vlgmr.msra.gmra.mrb[0].mxu0 %vm38_vm0, %v63_v29 }
 0x17d   :  { %v2870_v30 = vpop.f32.mrb[0].mxu0 }
 0x17e   :  { %153 = vrot.lane.b32.xlu0 %v2870_v30, %s2780_s15  ;;  %v2874_v31 = vpop.f32.mrb[1].mxu0  ;;  %v150_v47 = vmul.f32 %v2870_v30, %v2912_v41 }
 0x17f   :  { %151 = vrot.lane.b32.xlu1 %v2874_v31, %s2780_s15  ;;  %v2880_v32 = vpack.i.bf16 %v2870_v30, %v2874_v31  ;;  %v149_v40 = vmul.f32 %v2874_v31, %v2894_v34 }
 0x183   :  { %159 = vrot.lane.b32.xlu1 %v2874_v31, %s2781_s16 }
 0x187   :  { %161 = vrot.lane.b32.xlu1 %v2870_v30, %s2781_s16 }
 0x1f0   :  { %v154_v38 = vpop.permute.xlu0 %153 }
 0x1f1   :  { %v152_v35 = vpop.permute.xlu1 %151  ;;  %v156_v43 = vmul.f32 %v154_v38, %v2900_v37 }
 0x1f2   :  { %v155_v36 = vmul.f32 %v152_v35, %v2889_v33 }
 0x1f3   :  { %v158_v50 = vadd.f32 %v156_v43, %v150_v47 }
 0x1f4   :  { %v157_v44 = vadd.f32 %v155_v36, %v149_v40 }
 0x1f5   :  { %v160_v42 = vpop.permute.xlu1 %159 }
 0x1f6   :  { %v163_v45 = vmul.f32 %v160_v42, %v2905_v39 }
 0x1f8   :  { %v165_v48 = vadd.f32 %v163_v45, %v157_v44 }
 0x1f9   :  { %v162_v49 = vpop.permute.xlu1 %161 }
 0x1fa   :  { %v164_v51 = vmul.f32 %v162_v49, %v2919_v46  ;;  %2347 = vmatprep.mubr.msk.f32.mxu1 %vm177_vm1, %v165_v48 }
 0x1fc   :  { %v166_v52 = vadd.f32 %v164_v51, %v158_v50 }
 0x1fe   :  { %v2654_v53 = vpack.i.bf16 %v166_v52, %v165_v48 }
 0x200   :  { %2655 = vrot.lane.b32.xlu1 %v2654_v53, %s2779_s0 }
 0x272   :  { %v2656_v54 = vpop.permute.xlu1 %2655 }
 0x273   :  { %v2658_v55 = vunpack.i.h.bf16 %v2656_v54  ;;  %v2657_v56 = vunpack.i.l.bf16 %v2656_v54 }
 0x275   :  { %v2517_v58 = vpack.c.bf16 %v2658_v55, %v2657_v56 }
 0x277   :  { %2519 = vmatprep.subr.msk.bf16.mxu1 %vm2928_vm2, %v2517_v58 }
 0x278   :  { %2522 = vmatpush3.bf16.xpose.msk.msra.mxu1 %vm2928_vm2, %v2517_v58 }
 0x27f   :  { %2348 = vmatmul.mubr.msk.f32.vlgmr.msra.gmra.mrb[0].mxu1 %vm177_vm1, %v166_v52 }
 0x352   :  { %v2349_v60 = vpop.f32.mrb[0].mxu1 }
 0x353   :  { %v262_v61 = vmul.f32 %v2349_v60, %v2940_v59  ;;  %v252_v62 = vpop.f32.mrb[1].mxu1 }
 0x354   :  { %v261_v63 = vmul.f32 %v252_v62, %v2847_v6 }
 0x355   :  { %v264_v0 = vand.u32 2147483647, %v262_v61 }
 0x356   :  { %v263_v3 = vand.u32 2147483647, %v261_v63 }
 0x357   :  { %v268_v4 = vsel %vm177_vm1, %v264_v0, 0.0 }
 0x358   :  { %269 = vadd.xlane.f32.xlu0 %v268_v4  ;;  %v265_v7 = vsel %vm177_vm1, %v263_v3, 0.0  ;;  %v167_v3 = vld [vmem:[%s3291_s3] sm:$0xff]  ;;  %v168_v4 = vld [vmem:[%s3291_s3 + $0x8] sm:$0xff] }
 0x359   :  { %266 = vadd.xlane.f32.xlu1 %v265_v7  ;;  %v2527_v7 = vpack.c.bf16 %v168_v4, %v167_v3 }
 0x35b   :  { %2528 = vmatprep.subr.bf16.mxu1 %v2527_v7 }
 0x35c   :  { %2530 = vmatpush3.bf16.msra.mxu1 %v2527_v7 }
 0x36a   :  { %2660 = vrot.lane.b32.xlu1 %v2880_v32, %s2782_s8 }
 0x36e   :  { %2665 = vrot.lane.b32.xlu0 %v2654_v53, %s2783_s9  ;;  %496 = vrot.lane.b32.xlu1 %v165_v48, %s2784_s10 }
 0x372   :  { %498 = vrot.lane.b32.xlu1 %v166_v52, %s2784_s10 }
 0x3e5   :  { %v270_v8 = vpop.xlane.xlu0 %269 }
 0x3e6   :  { %v272_v9 = vmax.f32 %v270_v8, 1.0  ;;  %v267_v10 = vpop.xlane.xlu1 %266  ;;  %v2168_v8 = vmul.f32 -1.442695, %v2874_v31 }
 0x3e7   :  { %v271_v11 = vmax.f32 %v267_v10, 1.0 }
 0x3e8   :  { %v274_v12 = vmin.f32 %v272_v9, 50000.0  ;;  %v2169_v9 = vmul.f32 -1.442695, %v2870_v30 }
 0x3e9   :  { %v273_v13 = vmin.f32 %v271_v11, 50000.0  ;;  %v2666_v14 = vpop.permute.xlu0 %2665 }
 0x3ea   :  { %2698 = vrcp.f32 %v274_v12  ;;  %v2668_v15 = vunpack.i.h.bf16 %v2666_v14  ;;  %v2661_v16 = vpop.permute.xlu1 %2660  ;;  %v2667_v17 = vunpack.i.l.bf16 %v2666_v14 }
 0x3eb   :  { %2700 = vrcp.f32 %v273_v13  ;;  %v2663_v18 = vunpack.i.h.bf16 %v2661_v16  ;;  %v2662_v19 = vunpack.i.l.bf16 %v2661_v16 }
 0x3ec   :  { %v2531_v21 = vpack.c.bf16 %v2668_v15, %v2667_v17 }
 0x3ed   :  { %v2523_v20 = vpack.c.bf16 %v2663_v18, %v2662_v19 }
 0x3ee   :  { %v497_v26 = vpop.permute.xlu1 %496 }
 0x3ef   :  { %2524 = vmatprep.subr.bf16.mxu0 %v2523_v20 }
 0x3f0   :  { %2526 = vmatpush3.bf16.msra.mxu0 %v2523_v20 }
 0x3f1   :  { %2533 = vmatprep.subr.msk.bf16.mxu0 %vm2928_vm2, %v2531_v21 }
 0x3f2   :  { %v499_v27 = vpop.permute.xlu1 %498 }
 0x3f4   :  { %v2699_v22 = vpop.eup %2698 }
 0x3f5   :  { %v2701_v23 = vpop.eup %2700  ;;  %v278_v25 = vmul.f32 %v2699_v22, %v262_v61 }
 0x3f6   :  { %v277_v24 = vmul.f32 %v2701_v23, %v261_v63 }
 0x3f8   :  { %2354 = vmatprep.mubr.msk.f32.mxu0 %vm177_vm1, %v277_v24 }
 0x3f9   :  { %2355 = vmatmul.mubr.msk.f32.vlgmr.msra.gmra.mrb[2].mxu0 %vm177_vm1, %v278_v25 }
 0x3fa   :  { %2536 = vmatpush3.bf16.xpose.msk.msra.mxu0 %vm2928_vm2, %v2531_v21  ;;  %2368 = vmatprep.mubr.msk.f32.mxu0 %vm177_vm1, %v497_v26 }
 0x401   :  { %2369 = vmatmul.mubr.msk.f32.vlgmr.msra.gmra.mrb[4].mxu0 %vm177_vm1, %v499_v27 }
 0x4cc   :  { %v2356_v28 = vpop.f32.mrb[2].mxu0 }
 0x4cd   :  { %v383_v29 = vmul.f32 %v2356_v28, %v2356_v28  ;;  %v359_v35 = vpop.f32.mrb[3].mxu0 }
 0x4ce   :  { %v382_v36 = vmul.f32 %v359_v35, %v359_v35 }
 0x4cf   :  { %v387_v38 = vsel %vm177_vm1, %v383_v29, 0.0 }
 0x4d0   :  { %388 = vadd.xlane.f32.xlu0 %v387_v38  ;;  %v384_v40 = vsel %vm177_vm1, %v382_v36, 0.0 }
 0x4d1   :  { %385 = vadd.xlane.f32.xlu1 %v384_v40 }
 0x4d4   :  { %v2370_v42 = vpop.f32.mrb[4].mxu0 }
 0x4d5   :  { %v578_v43 = vpop.f32.mrb[5].mxu0 }
 0x4e2   :  { %591 = vrot.lane.b32.xlu1 %v2940_v59, %s2784_s10 }
 0x4e6   :  { %589 = vrot.lane.b32.xlu0 %v2847_v6, %s2784_s10 }
 0x55d   :  { %v389_v44 = vpop.xlane.xlu0 %388 }
 0x55e   :  { %v392_v45 = vmul.f32 0.0625, %v389_v44  ;;  %v386_v47 = vpop.xlane.xlu1 %385 }
 0x55f   :  { %v391_v48 = vmul.f32 0.0625, %v386_v47 }
 0x560   :  { %v394_v49 = vadd.f32 1e-06, %v392_v45 }
 0x561   :  { %v393_v50 = vadd.f32 1e-06, %v391_v48  ;;  %v2970_v58 = vpop.permute.xlu0 %589 }
 0x562   :  { %2702 = vrsqrt.f32 %v394_v49  ;;  %v2967_v55 = vpop.permute.xlu1 %591  ;;  %v595_v61 = vmul.f32 %v2970_v58, %v578_v43 }
 0x563   :  { %2704 = vrsqrt.f32 %v393_v50  ;;  %v596_v56 = vmul.f32 %v2370_v42, %v2967_v55 }
 0x564   :  { %v597_v63 = vand.u32 2147483647, %v595_v61  ;;  %2706 = vpow2.f32 %v2168_v8 }
 0x565   :  { %v598_v60 = vand.u32 2147483647, %v596_v56  ;;  %2708 = vpow2.f32 %v2169_v9 }
 0x566   :  { %v599_v0 = vsel %vm177_vm1, %v597_v63, 0.0 }
 0x567   :  { %v602_v62 = vsel %vm177_vm1, %v598_v60, 0.0 }
 0x56c   :  { %v2703_v51 = vpop.eup %2702 }
 0x56d   :  { %v2705_v52 = vpop.eup %2704  ;;  %v398_v53 = vmul.f32 %v2703_v51, %v2356_v28 }
 0x56e   :  { %v397_v54 = vmul.f32 %v2705_v52, %v359_v35  ;;  %v2707_v10 = vpop.eup %2706 }
 0x56f   :  { %403 = vrot.lane.b32.xlu0 %v398_v53, %s2779_s0  ;;  %v374_v11 = vadd.f32 1.0, %v2707_v10  ;;  %v2709_v12 = vpop.eup %2708 }
 0x570   :  { %401 = vrot.lane.b32.xlu1 %v397_v54, %s2779_s0  ;;  %v375_v13 = vadd.f32 1.0, %v2709_v12 }
 0x571   :  { %2710 = vrcp.f32 %v374_v11 }
 0x572   :  { %2712 = vrcp.f32 %v375_v13 }
 0x57b   :  { %v2711_v14 = vpop.eup %2710 }
 0x57c   :  { %v2986_v15 = vmul.f32 %v2711_v14, %v2874_v31  ;;  %v2713_v16 = vpop.eup %2712 }
 0x57d   :  { %v381_v19 = vmul.f32 %v2713_v16, %v2870_v30 }
 0x58e   :  { %603 = vadd.xlane.f32.xlu0 %v602_v62 }
 0x594   :  { %600 = vadd.xlane.f32.xlu1 %v599_v0 }
 0x5a4   :  { %2670 = vrot.lane.b32.xlu0 %v2880_v32, %s2785_s17 }
 0x5e1   :  { %v404_v18 = vpop.permute.xlu0 %403 }
 0x5e2   :  { %v402_v17 = vpop.permute.xlu1 %401  ;;  %v408_v20 = vmul.f32 %v404_v18, %v381_v19 }
 0x5e3   :  { %v407_v32 = vmul.f32 %v402_v17, %v2986_v15 }
 0x5e5   :  { %411 = vrot.lane.b32.xlu1 %v407_v32, %s2786_s18 }
 0x5e9   :  { %413 = vrot.lane.b32.xlu1 %v408_v20, %s2786_s18  ;;  %v831_v20 = vsub.s32 2, %v2842_v5 }
 0x61b   :  { %v604_v21 = vpop.xlane.xlu0 %603 }
 0x61c   :  { %v606_v27 = vmax.f32 %v604_v21, 1.0  ;;  %v840_v21 = vld [vmem:[%s3292_s4 + $0x8] sm:$0xff] }
 0x61e   :  { %v608_v29 = vmin.f32 %v606_v27, 50000.0 }
 0x61f   :  { %v2671_v22 = vpop.permute.xlu0 %2670 }
 0x620   :  { %v2673_v23 = vunpack.i.h.bf16 %v2671_v22  ;;  %v2672_v24 = vunpack.i.l.bf16 %v2671_v22 }
 0x621   :  { %v601_v31 = vpop.xlane.xlu1 %600 }
 0x622   :  { %v2537_v25 = vpack.c.bf16 %v2673_v23, %v2672_v24  ;;  %v605_v26 = vmax.f32 %v601_v31, 1.0  ;;  %v841_v23 = vld [vmem:[%s3292_s4 + $0x10] sm:$0xff]  ;;  %v842_v24 = vld [vmem:[%s3292_s4 + $0x18] sm:$0xff] }
 0x624   :  { %2538 = vmatprep.subr.bf16.mxu1 %v2537_v25  ;;  %v607_v28 = vmin.f32 %v605_v26, 50000.0 }
 0x626   :  { %2714 = vrcp.f32 %v607_v28 }
 0x627   :  { %2716 = vrcp.f32 %v608_v29 }
 0x630   :  { %v2715_v35 = vpop.eup %2714 }
 0x631   :  { %v2717_v36 = vpop.eup %2716  ;;  %v611_v40 = vmul.f32 %v2715_v35, %v595_v61  ;;  %v170_v61 = vld [vmem:[%s3291_s3 + $0x18] sm:$0xff] }
 0x632   :  { %v612_v42 = vmul.f32 %v2717_v36, %v596_v56  ;;  %v169_v56 = vld [vmem:[%s3291_s3 + $0x10] sm:$0xff] }
 0x633   :  { %v2541_v62 = vpack.c.bf16 %v170_v61, %v169_v56  ;;  %v955_v56 = vld [vmem:[%s3293_s5 + $0x38] sm:$0xff] }
 0x657   :  { %v412_v30 = vpop.permute.xlu1 %411 }
 0x658   :  { %2361 = vmatprep.mubr.msk.f32.mxu1 %vm177_vm1, %v412_v30 }
 0x65b   :  { %v414_v38 = vpop.permute.xlu1 %413 }
 0x65c   :  { %2362 = vmatmul.mubr.msk.f32.vlgmr.msra.gmra.mrb[2].mxu1 %vm177_vm1, %v414_v38 }
 0x65d   :  { %2540 = vmatpush3.bf16.msra.mxu1 %v2537_v25  ;;  %2375 = vmatprep.mubr.msk.f32.mxu1 %vm177_vm1, %v611_v40  ;;  %v2549_v25 = vpack.c.bf16 %v842_v24, %v841_v23 }
 0x65e   :  { %2542 = vmatprep.subr.bf16.mxu1 %v2541_v62 }
 0x660   :  { %2376 = vmatmul.mubr.msk.f32.vlgmr.msra.gmra.mrb[4].mxu1 %vm177_vm1, %v612_v42 }
 0x661   :  { %2544 = vmatpush3.bf16.msra.mxu1 %v2541_v62 }
 0x733   :  { %v2377_v43 = vpop.f32.mrb[4].mxu1 }
 0x734   :  { %v701_v44 = vmul.f32 %v2377_v43, %v2377_v43  ;;  %v691_v45 = vpop.f32.mrb[5].mxu1 }
 0x735   :  { %v700_v47 = vmul.f32 %v691_v45, %v691_v45 }
 0x736   :  { %v705_v48 = vsel %vm177_vm1, %v701_v44, 0.0 }
 0x737   :  { %706 = vadd.xlane.f32.xlu1 %v705_v48  ;;  %v702_v49 = vsel %vm177_vm1, %v700_v47, 0.0  ;;  %v949_v47 = vld [vmem:[%s3293_s5 + $0x8] sm:$0xff]  ;;  %v950_v48 = vld [vmem:[%s3293_s5 + $0x10] sm:$0xff] }
 0x738   :  { %703 = vadd.xlane.f32.xlu0 %v702_v49 }
 0x7c4   :  { %v707_v50 = vpop.xlane.xlu1 %706 }
 0x7c5   :  { %v709_v51 = vmul.f32 0.0625, %v707_v50  ;;  %v704_v52 = vpop.xlane.xlu0 %703  ;;  %v951_v50 = vld [vmem:[%s3293_s5 + $0x18] sm:$0xff] }
 0x7c6   :  { %v708_v53 = vmul.f32 0.0625, %v704_v52  ;;  %v952_v52 = vld [vmem:[%s3293_s5 + $0x20] sm:$0xff] }
 0x7c7   :  { %v711_v54 = vadd.f32 1e-06, %v709_v51  ;;  %v2557_v51 = vpack.c.bf16 %v951_v50, %v950_v48 }
 0x7c8   :  { %v710_v60 = vadd.f32 1e-06, %v708_v53  ;;  %v953_v53 = vld [vmem:[%s3293_s5 + $0x28] sm:$0xff] }
 0x7c9   :  { %2718 = vrsqrt.f32 %v711_v54  ;;  %v2561_v54 = vpack.c.bf16 %v953_v53, %v952_v52 }
 0x7ca   :  { %2720 = vrsqrt.f32 %v710_v60  ;;  %v954_v60 = vld [vmem:[%s3293_s5 + $0x30] sm:$0xff] }
 0x7d3   :  { %v2719_v63 = vpop.eup %2718 }
 0x7d4   :  { %v2721_v0 = vpop.eup %2720  ;;  %v715_v3 = vmul.f32 %v2719_v63, %v2377_v43  ;;  %v2565_v63 = vpack.c.bf16 %v955_v56, %v954_v60 }
 0x7d5   :  { %v714_v4 = vmul.f32 %v2721_v0, %v691_v45  ;;  %v948_v45 = vld [vmem:[%s3293_s5] sm:$0xff] }
 0x7d6   :  { %720 = vrot.lane.b32.xlu1 %v715_v3, %s2784_s10  ;;  %v2553_v49 = vpack.c.bf16 %v949_v47, %v948_v45 }
 0x7d7   :  { %718 = vrot.lane.b32.xlu0 %v714_v4, %s2784_s10 }
 0x7d8   :  { %2554 = vmatprep.subr.bf16.mxu1 %v2553_v49 }
 0x848   :  { %v721_v7 = vpop.permute.xlu1 %720 }
 0x849   :  { %v725_v8 = vmul.f32 %v721_v7, %v381_v19  ;;  %v719_v9 = vpop.permute.xlu0 %718 }
 0x84a   :  { %v724_v10 = vmul.f32 %v719_v9, %v2986_v15 }
 0x84b   :  { %730 = vrot.lane.b32.xlu1 %v725_v8, %s2787_s23 }
 0x84c   :  { %728 = vrot.lane.b32.xlu0 %v724_v10, %s2787_s23 }
 0x8bd   :  { %v731_v12 = vpop.permute.xlu1 %730 }
 0x8be   :  { %v729_v11 = vpop.permute.xlu0 %728 }
 0x8bf   :  { %2382 = vmatprep.mubr.msk.f32.mxu1 %vm177_vm1, %v729_v11 }
 0x8c0   :  { %2383 = vmatmul.mubr.msk.f32.vlgmr.msra.gmra.mrb[2].mxu1 %vm177_vm1, %v731_v12 }
 0x8c1   :  { %2556 = vmatpush3.bf16.msra.mxu1 %v2553_v49 }
 0x8c2   :  { %2558 = vmatprep.subr.bf16.mxu1 %v2557_v51 }
 0x8c5   :  { %2560 = vmatpush3.bf16.msra.mxu1 %v2557_v51 }
 0x8c6   :  { %2562 = vmatprep.subr.bf16.mxu1 %v2561_v54 }
 0x8c9   :  { %2564 = vmatpush3.bf16.msra.mxu1 %v2561_v54 }
 0x8ca   :  { %2566 = vmatprep.subr.bf16.mxu1 %v2565_v63 }
 0x8cd   :  { %2568 = vmatpush3.bf16.msra.mxu1 %v2565_v63 }
 0x993   :  { %v2384_v13 = vpop.f32.mrb[2].mxu1 }
 0x994   :  { %v3012_v14 = vadd.f32 %v2384_v13, %v2836_v2  ;;  %v802_v16 = vpop.f32.mrb[3].mxu1  ;;  %v832_v2 = vrot.slane %v2847_v6, %v831_v20 }
 0x995   :  { %v3015_v17 = vadd.f32 %v802_v16, %v2831_v1  ;;  %v839_v1 = vld [vmem:[%s3292_s4] sm:$0xff] }
 0x996   :  { %v814_v15 = vmul.f32 %v3012_v14, %v3012_v14  ;;  %v2545_v22 = vpack.c.bf16 %v840_v21, %v839_v1 }
 0x997   :  { %v813_v32 = vmul.f32 %v3015_v17, %v3015_v17 }
 0x998   :  { %v818_v18 = vsel %vm38_vm0, %v814_v15, 0.0  ;;  %2546 = vmatprep.subr.bf16.mxu0 %v2545_v22 }
 0x999   :  { %819 = vadd.xlane.f32.xlu1 %v818_v18  ;;  %v815_v19 = vsel %vm38_vm0, %v813_v32, 0.0  ;;  %2548 = vmatpush3.bf16.msra.mxu0 %v2545_v22 }
 0x99a   :  { %816 = vadd.xlane.f32.xlu0 %v815_v19  ;;  %2550 = vmatprep.subr.bf16.mxu0 %v2549_v25 }
 0x99d   :  { %2552 = vmatpush3.bf16.msra.mxu0 %v2549_v25 }
 0x9b0   :  { %834 = vrot.lane.b32.xlu0 %v832_v2, %s2779_s0 }
 0xa26   :  { %v820_v31 = vpop.xlane.xlu1 %819 }
 0xa27   :  { %v822_v26 = vmul.f32 0.03125, %v820_v31  ;;  %v817_v27 = vpop.xlane.xlu0 %816 }
 0xa28   :  { %v821_v28 = vmul.f32 0.03125, %v817_v27  ;;  %v2187_v27 = vld [vmem:[%s3290_s2 + $0x28] sm:$0xff] }
 0xa29   :  { %v824_v29 = vadd.f32 1e-06, %v822_v26  ;;  %v1062_v26 = vsub.s32 1, %v2842_v5 }
 0xa2a   :  { %v823_v30 = vadd.f32 1e-06, %v821_v28 }
 0xa2b   :  { %2722 = vrsqrt.f32 %v824_v29  ;;  %v835_v40 = vpop.permute.xlu0 %834  ;;  %v2188_v29 = vld [vmem:[%s3290_s2 + $0x30] sm:$0xff] }
 0xa2c   :  { %2724 = vrsqrt.f32 %v823_v30  ;;  %v2189_v30 = vld [vmem:[%s3290_s2 + $0x38] sm:$0xff] }
 0xa35   :  { %v2723_v35 = vpop.eup %2722 }
 0xa36   :  { %v2725_v36 = vpop.eup %2724  ;;  %v828_v38 = vmul.f32 %v2723_v35, %v3012_v14  ;;  %v2573_v35 = vpack.c.bf16 %v2189_v30, %v2188_v29 }
 0xa37   :  { %v827_v42 = vmul.f32 %v2725_v36, %v3015_v17 }
 0xa38   :  { %v838_v44 = vmul.f32 %v835_v40, %v828_v38 }
 0xa39   :  { %v837_v43 = vmul.f32 %v835_v40, %v827_v42 }
 0xa3b   :  { %2393 = vmatprep.mubr.msk.f32.mxu0 %vm38_vm0, %v837_v43 }
 0xa3c   :  { %2394 = vmatmul.mubr.msk.f32.vlgmr.msra.gmra.mrb[6].mxu0 %vm38_vm0, %v838_v44 }
 0xb0f   :  { %v2395_v61 = vpop.f32.mrb[6].mxu0 }
 0xb10   :  { %942 = vrot.lane.b32.xlu0 %v2395_v61, %s2782_s8  ;;  %v915_v62 = vpop.f32.mrb[7].mxu0  ;;  %v2183_v0 = vmul.f32 -1.442695, %v2395_v61 }
 0xb11   :  { %940 = vrot.lane.b32.xlu1 %v915_v62, %s2782_s8  ;;  %v2182_v3 = vmul.f32 -1.442695, %v915_v62 }
 0xb12   :  { %2726 = vpow2.f32 %v2183_v0 }
 0xb13   :  { %2728 = vpow2.f32 %v2182_v3 }
 0xb1c   :  { %v2727_v4 = vpop.eup %2726 }
 0xb1d   :  { %v2729_v7 = vpop.eup %2728  ;;  %v931_v8 = vadd.f32 1.0, %v2727_v4 }
 0xb1e   :  { %v930_v9 = vadd.f32 1.0, %v2729_v7 }
 0xb1f   :  { %2730 = vrcp.f32 %v931_v8 }
 0xb20   :  { %2732 = vrcp.f32 %v930_v9 }
 0xb29   :  { %v2731_v10 = vpop.eup %2730 }
 0xb2a   :  { %v2733_v11 = vpop.eup %2732  ;;  %v937_v12 = vmul.f32 %v2731_v10, %v2395_v61 }
 0xb2b   :  { %v936_v16 = vmul.f32 %v2733_v11, %v915_v62 }
 0xb82   :  { %v943_v13 = vpop.permute.xlu0 %942 }
 0xb83   :  { %v947_v15 = vmul.f32 %v943_v13, %v937_v12  ;;  %v941_v32 = vpop.permute.xlu1 %940 }
 0xb84   :  { %v946_v18 = vmul.f32 %v941_v32, %v936_v16 }
 0xb85   :  { %960 = vrot.lane.b32.xlu0 %v947_v15, %s2782_s8 }
 0xb86   :  { %958 = vrot.lane.b32.xlu1 %v946_v18, %s2782_s8 }
 0xbf7   :  { %v961_v20 = vpop.permute.xlu0 %960 }
 0xbf8   :  { %v959_v19 = vpop.permute.xlu1 %958 }
 0xbf9   :  { %2412 = vmatprep.mubr.msk.f32.mxu1 %vm962_vm3, %v959_v19 }
 0xbfa   :  { %2413 = vmatmul.mubr.msk.f32.vlgmr.msra.gmra.mrb[6].mxu1 %vm962_vm3, %v961_v20 }
 0xccd   :  { %v2414_v2 = vpop.f32.mrb[6].mxu1 }
 0xcce   :  { %v3073_v1 = vadd.f32 %v3012_v14, %v2414_v2  ;;  %v1033_v21 = vpop.f32.mrb[7].mxu1  ;;  %v1063_v14 = vrot.slane %v2847_v6, %v1062_v26 }
 0xccf   :  { %v3076_v22 = vadd.f32 %v3015_v17, %v1033_v21  ;;  %v2186_v17 = vld [vmem:[%s3290_s2 + $0x20] sm:$0xff] }
 0xcd0   :  { %v1045_v23 = vmul.f32 %v3073_v1, %v3073_v1  ;;  %v2569_v28 = vpack.c.bf16 %v2187_v27, %v2186_v17 }
 0xcd1   :  { %v1044_v24 = vmul.f32 %v3076_v22, %v3076_v22 }
 0xcd2   :  { %v1049_v25 = vsel %vm38_vm0, %v1045_v23, 0.0  ;;  %2570 = vmatprep.subr.bf16.mxu0 %v2569_v28 }
 0xcd3   :  { %1050 = vadd.xlane.f32.xlu0 %v1049_v25  ;;  %v1046_v31 = vsel %vm38_vm0, %v1044_v24, 0.0  ;;  %2572 = vmatpush3.bf16.msra.mxu0 %v2569_v28 }
 0xcd4   :  { %1047 = vadd.xlane.f32.xlu1 %v1046_v31  ;;  %2574 = vmatprep.subr.bf16.mxu0 %v2573_v35 }
 0xcd7   :  { %2576 = vmatpush3.bf16.msra.mxu0 %v2573_v35 }
 0xce9   :  { %1065 = vrot.lane.b32.xlu0 %v1063_v14, %s2779_s0 }
 0xd60   :  { %v1051_v36 = vpop.xlane.xlu0 %1050 }
 0xd61   :  { %v1053_v38 = vmul.f32 0.03125, %v1051_v36  ;;  %v1048_v40 = vpop.xlane.xlu1 %1047 }
 0xd62   :  { %v1052_v42 = vmul.f32 0.03125, %v1048_v40 }
 0xd63   :  { %v1055_v43 = vadd.f32 1e-06, %v1053_v38 }
 0xd64   :  { %v1054_v44 = vadd.f32 1e-06, %v1052_v42  ;;  %v1066_v49 = vpop.permute.xlu0 %1065 }
 0xd65   :  { %2734 = vrsqrt.f32 %v1055_v43 }
 0xd66   :  { %2736 = vrsqrt.f32 %v1054_v44 }
 0xd6f   :  { %v2735_v45 = vpop.eup %2734 }
 0xd70   :  { %v2737_v47 = vpop.eup %2736  ;;  %v1059_v48 = vmul.f32 %v2735_v45, %v3073_v1 }
 0xd71   :  { %v1058_v50 = vmul.f32 %v2737_v47, %v3076_v22 }
 0xd72   :  { %v1069_v52 = vmul.f32 %v1066_v49, %v1059_v48 }
 0xd73   :  { %v1068_v51 = vmul.f32 %v1066_v49, %v1058_v50 }
 0xd75   :  { %2423 = vmatprep.mubr.msk.f32.mxu0 %vm38_vm0, %v1068_v51 }
 0xd76   :  { %2424 = vmatmul.mubr.msk.f32.vlgmr.msra.gmra.mrb[8].mxu0 %vm38_vm0, %v1069_v52 }
 0xe49   :  { %v3103_v53 = vpop.f32.mrb[8].mxu0 }
 0xe4a   :  { %1160 = vrot.lane.b32.xlu1 %v3103_v53, %s2780_s15  ;;  %v3107_v54 = vpop.f32.mrb[9].mxu0  ;;  %v1157_v4 = vmul.f32 %v3103_v53, %v2912_v41 }
 0xe4b   :  { %1166 = vrot.lane.b32.xlu0 %v3107_v54, %s2781_s16  ;;  %v3113_v60 = vpack.i.bf16 %v3103_v53, %v3107_v54  ;;  %v1156_v0 = vmul.f32 %v3107_v54, %v2894_v34 }
 0xe4e   :  { %1158 = vrot.lane.b32.xlu1 %v3107_v54, %s2780_s15 }
 0xe52   :  { %1168 = vrot.lane.b32.xlu1 %v3103_v53, %s2781_s16 }
 0xebc   :  { %v1161_v56 = vpop.permute.xlu1 %1160 }
 0xebd   :  { %v1167_v61 = vpop.permute.xlu0 %1166  ;;  %v1163_v63 = vmul.f32 %v1161_v56, %v2900_v37 }
 0xebe   :  { %v1170_v7 = vmul.f32 %v1167_v61, %v2905_v39 }
 0xebf   :  { %v1165_v10 = vadd.f32 %v1163_v63, %v1157_v4 }
 0xec0   :  { %v1159_v62 = vpop.permute.xlu1 %1158 }
 0xec1   :  { %v1162_v3 = vmul.f32 %v1159_v62, %v2889_v33 }
 0xec3   :  { %v1164_v8 = vadd.f32 %v1162_v3, %v1156_v0 }
 0xec4   :  { %v1169_v9 = vpop.permute.xlu1 %1168 }
 0xec5   :  { %v1172_v11 = vadd.f32 %v1170_v7, %v1164_v8  ;;  %v1171_v12 = vmul.f32 %v1169_v9, %v2919_v46 }
 0xec7   :  { %v1173_v13 = vadd.f32 %v1171_v12, %v1165_v10  ;;  %2430 = vmatprep.mubr.msk.f32.mxu0 %vm177_vm1, %v1172_v11 }
 0xec9   :  { %v2674_v37 = vpack.i.bf16 %v1173_v13, %v1172_v11 }
 0xecb   :  { %2675 = vrot.lane.b32.xlu0 %v2674_v37, %s2779_s0 }
 0xf3d   :  { %v2676_v34 = vpop.permute.xlu0 %2675 }
 0xf3e   :  { %v2678_v16 = vunpack.i.h.bf16 %v2676_v34  ;;  %v2677_v33 = vunpack.i.l.bf16 %v2676_v34  ;;  %v2192_v34 = vld [vmem:[%s3291_s3 + $0x20] sm:$0xff] }
 0xf40   :  { %v2577_v15 = vpack.c.bf16 %v2678_v16, %v2677_v33  ;;  %v2193_v16 = vld [vmem:[%s3291_s3 + $0x28] sm:$0xff] }
 0xf41   :  { %v2587_v33 = vpack.c.bf16 %v2193_v16, %v2192_v34 }
 0xf42   :  { %2579 = vmatprep.subr.msk.bf16.mxu0 %vm2928_vm2, %v2577_v15 }
 0xf43   :  { %2582 = vmatpush3.bf16.xpose.msk.msra.mxu0 %vm2928_vm2, %v2577_v15 }
 0xf4a   :  { %2431 = vmatmul.mubr.msk.f32.vlgmr.msra.gmra.mrb[10].mxu0 %vm177_vm1, %v1173_v13 }
0x101d   :  { %v2432_v39 = vpop.f32.mrb[10].mxu0 }
0x101e   :  { %v1269_v41 = vmul.f32 %v2432_v39, %v2940_v59  ;;  %v1259_v46 = vpop.f32.mrb[11].mxu0 }
0x101f   :  { %v1268_v32 = vmul.f32 %v1259_v46, %v2847_v6 }
0x1020   :  { %v1271_v18 = vand.u32 2147483647, %v1269_v41 }
0x1021   :  { %v1270_v19 = vand.u32 2147483647, %v1268_v32 }
0x1022   :  { %v1275_v20 = vsel %vm177_vm1, %v1271_v18, 0.0 }
0x1023   :  { %1276 = vadd.xlane.f32.xlu0 %v1275_v20  ;;  %v1272_v2 = vsel %vm177_vm1, %v1270_v19, 0.0 }
0x1024   :  { %1273 = vadd.xlane.f32.xlu1 %v1272_v2 }
0x1035   :  { %2685 = vrot.lane.b32.xlu1 %v2674_v37, %s2783_s9 }
0x1039   :  { %2680 = vrot.lane.b32.xlu0 %v3113_v60, %s2782_s8  ;;  %1502 = vrot.lane.b32.xlu1 %v1172_v11, %s2784_s10 }
0x103d   :  { %1504 = vrot.lane.b32.xlu0 %v1173_v13, %s2784_s10 }
0x10b0   :  { %v1277_v59 = vpop.xlane.xlu0 %1276 }
0x10b1   :  { %v1279_v21 = vmax.f32 %v1277_v59, 1.0  ;;  %v1274_v6 = vpop.xlane.xlu1 %1273 }
0x10b2   :  { %v1278_v23 = vmax.f32 %v1274_v6, 1.0 }
0x10b3   :  { %v1281_v24 = vmin.f32 %v1279_v21, 50000.0 }
0x10b4   :  { %v1280_v25 = vmin.f32 %v1278_v23, 50000.0  ;;  %v2681_v31 = vpop.permute.xlu0 %2680 }
0x10b5   :  { %2738 = vrcp.f32 %v1281_v24  ;;  %v2683_v26 = vunpack.i.h.bf16 %v2681_v31  ;;  %v2682_v14 = vunpack.i.l.bf16 %v2681_v31  ;;  %v2686_v17 = vpop.permute.xlu1 %2685 }
0x10b6   :  { %2740 = vrcp.f32 %v1280_v25  ;;  %v2688_v27 = vunpack.i.h.bf16 %v2686_v17  ;;  %v2687_v28 = vunpack.i.l.bf16 %v2686_v17 }
0x10b7   :  { %v2583_v29 = vpack.c.bf16 %v2683_v26, %v2682_v14 }
0x10b8   :  { %v2591_v30 = vpack.c.bf16 %v2688_v27, %v2687_v28  ;;  %v1505_v40 = vpop.permute.xlu0 %1504 }
0x10b9   :  { %2584 = vmatprep.subr.bf16.mxu1 %v2583_v29  ;;  %v1503_v35 = vpop.permute.xlu1 %1502 }
0x10ba   :  { %2586 = vmatpush3.bf16.msra.mxu1 %v2583_v29  ;;  %2593 = vmatprep.subr.msk.bf16.mxu0 %vm2928_vm2, %v2591_v30 }
0x10bb   :  { %2451 = vmatprep.mubr.msk.f32.mxu0 %vm177_vm1, %v1503_v35  ;;  %2596 = vmatpush3.bf16.xpose.msk.msra.mxu0 %vm2928_vm2, %v2591_v30 }
0x10bc   :  { %2588 = vmatprep.subr.bf16.mxu1 %v2587_v33 }
0x10bf   :  { %v2739_v36 = vpop.eup %2738 }
0x10c0   :  { %v2741_v38 = vpop.eup %2740  ;;  %v1285_v43 = vmul.f32 %v2739_v36, %v1269_v41 }
0x10c1   :  { %v1284_v42 = vmul.f32 %v2741_v38, %v1268_v32 }
0x10c2   :  { %2452 = vmatmul.mubr.msk.f32.vlgmr.msra.gmra.mrb[12].mxu0 %vm177_vm1, %v1505_v40 }
0x10c3   :  { %2437 = vmatprep.mubr.msk.f32.mxu1 %vm177_vm1, %v1284_v42 }
0x10c4   :  { %2438 = vmatmul.mubr.msk.f32.vlgmr.msra.gmra.mrb[8].mxu1 %vm177_vm1, %v1285_v43 }
0x10c5   :  { %2590 = vmatpush3.bf16.msra.mxu1 %v2587_v33 }
0x1195   :  { %v2453_v44 = vpop.f32.mrb[12].mxu0 }
0x1196   :  { %v1584_v45 = vpop.f32.mrb[13].mxu0  ;;  %v1594_v9 = vmul.f32 %v2453_v44, %v2967_v55  ;;  %v2202_v55 = vmul.f32 -1.442695, %v3107_v54 }
0x1197   :  { %v2439_v47 = vpop.f32.mrb[8].mxu1  ;;  %v1593_v10 = vmul.f32 %v1584_v45, %v2970_v58  ;;  %v2203_v58 = vmul.f32 -1.442695, %v3103_v53 }
0x1198   :  { %v1390_v48 = vmul.f32 %v2439_v47, %v2439_v47  ;;  %v1366_v49 = vpop.f32.mrb[9].mxu1  ;;  %v1596_v11 = vand.u32 2147483647, %v1594_v9 }
0x1199   :  { %v1389_v50 = vmul.f32 %v1366_v49, %v1366_v49  ;;  %v1595_v13 = vand.u32 2147483647, %v1593_v10 }
0x119a   :  { %v1394_v57 = vsel %vm177_vm1, %v1390_v48, 0.0  ;;  %v1600_v12 = vsel %vm177_vm1, %v1596_v11, 0.0 }
0x119b   :  { %1395 = vadd.xlane.f32.xlu0 %v1394_v57  ;;  %v1391_v51 = vsel %vm177_vm1, %v1389_v50, 0.0  ;;  %v1597_v37 = vsel %vm177_vm1, %v1595_v13, 0.0 }
0x119c   :  { %1392 = vadd.xlane.f32.xlu1 %v1391_v51 }
0x1228   :  { %v1396_v52 = vpop.xlane.xlu0 %1395 }
0x1229   :  { %v1398_v56 = vmul.f32 0.0625, %v1396_v52  ;;  %v1393_v61 = vpop.xlane.xlu1 %1392  ;;  %v2194_v52 = vld [vmem:[%s3291_s3 + $0x30] sm:$0xff] }
0x122a   :  { %v1397_v62 = vmul.f32 0.0625, %v1393_v61 }
0x122b   :  { %v1400_v63 = vadd.f32 1e-06, %v1398_v56  ;;  %v2195_v56 = vld [vmem:[%s3291_s3 + $0x38] sm:$0xff] }
0x122c   :  { %v1399_v0 = vadd.f32 1e-06, %v1397_v62  ;;  %v2601_v61 = vpack.c.bf16 %v2195_v56, %v2194_v52 }
0x122d   :  { %2742 = vrsqrt.f32 %v1400_v63 }
0x122e   :  { %2744 = vrsqrt.f32 %v1399_v0 }
0x122f   :  { %2746 = vpow2.f32 %v2202_v55 }
0x1230   :  { %2748 = vpow2.f32 %v2203_v58 }
0x1237   :  { %v2743_v3 = vpop.eup %2742 }
0x1238   :  { %v2745_v4 = vpop.eup %2744  ;;  %v1404_v7 = vmul.f32 %v2743_v3, %v2439_v47 }
0x1239   :  { %v1403_v8 = vmul.f32 %v2745_v4, %v1366_v49  ;;  %v2747_v15 = vpop.eup %2746 }
0x123a   :  { %1409 = vrot.lane.b32.xlu1 %v1404_v7, %s2779_s0  ;;  %v1381_v39 = vadd.f32 1.0, %v2747_v15  ;;  %v2749_v41 = vpop.eup %2748  ;;  %v1829_v15 = vsub.s32 3, %v2842_v5 }
0x123b   :  { %1407 = vrot.lane.b32.xlu0 %v1403_v8, %s2779_s0  ;;  %v1382_v46 = vadd.f32 1.0, %v2749_v41  ;;  %v2215_v41 = vld [vmem:[%s3292_s4 + $0x28] sm:$0xff] }
0x123c   :  { %2750 = vrcp.f32 %v1381_v39  ;;  %v2214_v39 = vld [vmem:[%s3292_s4 + $0x20] sm:$0xff] }
0x123d   :  { %2752 = vrcp.f32 %v1382_v46  ;;  %v2605_v46 = vpack.c.bf16 %v2215_v41, %v2214_v39  ;;  %v2071_v39 = vld [vmem:[%s3294_s6 + $0x10] sm:$0xff] }
0x123f   :  { %2606 = vmatprep.subr.bf16.mxu0 %v2605_v46 }
0x1240   :  { %2608 = vmatpush3.bf16.msra.mxu0 %v2605_v46 }
0x1246   :  { %v2751_v32 = vpop.eup %2750 }
0x1247   :  { %v3170_v18 = vmul.f32 %v2751_v32, %v3107_v54  ;;  %v2753_v19 = vpop.eup %2752  ;;  %v2216_v32 = vld [vmem:[%s3292_s4 + $0x30] sm:$0xff] }
0x1248   :  { %v1388_v59 = vmul.f32 %v2753_v19, %v3103_v53 }
0x125a   :  { %1601 = vadd.xlane.f32.xlu0 %v1600_v12 }
0x125e   :  { %1598 = vadd.xlane.f32.xlu1 %v1597_v37 }
0x1270   :  { %2690 = vrot.lane.b32.xlu0 %v3113_v60, %s2785_s17 }
0x12ac   :  { %v1410_v2 = vpop.permute.xlu1 %1409 }
0x12ad   :  { %v1408_v20 = vpop.permute.xlu0 %1407  ;;  %v1414_v21 = vmul.f32 %v1410_v2, %v1388_v59 }
0x12ae   :  { %v1413_v60 = vmul.f32 %v1408_v20, %v3170_v18 }
0x12b0   :  { %1417 = vrot.lane.b32.xlu1 %v1413_v60, %s2786_s18 }
0x12b4   :  { %1419 = vrot.lane.b32.xlu1 %v1414_v21, %s2786_s18 }
0x12e7   :  { %v1602_v6 = vpop.xlane.xlu0 %1601 }
0x12e8   :  { %v1604_v14 = vmax.f32 %v1602_v6, 1.0 }
0x12ea   :  { %v1606_v27 = vmin.f32 %v1604_v14, 50000.0 }
0x12eb   :  { %v2691_v23 = vpop.permute.xlu0 %2690  ;;  %v1599_v54 = vpop.xlane.xlu1 %1598 }
0x12ec   :  { %v2693_v24 = vunpack.i.h.bf16 %v2691_v23  ;;  %v2692_v25 = vunpack.i.l.bf16 %v2691_v23  ;;  %v1603_v26 = vmax.f32 %v1599_v54, 1.0 }
0x12ee   :  { %v2597_v31 = vpack.c.bf16 %v2693_v24, %v2692_v25  ;;  %v1605_v17 = vmin.f32 %v1603_v26, 50000.0 }
0x12f0   :  { %2598 = vmatprep.subr.bf16.mxu1 %v2597_v31  ;;  %2754 = vrcp.f32 %v1605_v17  ;;  %v2222_v17 = vld [vmem:[%s3293_s5 + $0x40] sm:$0xff] }
0x12f1   :  { %2756 = vrcp.f32 %v1606_v27  ;;  %v2223_v27 = vld [vmem:[%s3293_s5 + $0x48] sm:$0xff] }
0x12fa   :  { %v2755_v53 = vpop.eup %2754 }
0x12fb   :  { %v2757_v29 = vpop.eup %2756  ;;  %v1609_v35 = vmul.f32 %v2755_v53, %v1593_v10  ;;  %v2613_v53 = vpack.c.bf16 %v2223_v27, %v2222_v17 }
0x12fc   :  { %v1610_v36 = vmul.f32 %v2757_v29, %v1594_v9  ;;  %v2225_v29 = vld [vmem:[%s3293_s5 + $0x58] sm:$0xff] }
0x1322   :  { %v1418_v28 = vpop.permute.xlu1 %1417 }
0x1323   :  { %2444 = vmatprep.mubr.msk.f32.mxu1 %vm177_vm1, %v1418_v28  ;;  %v2224_v28 = vld [vmem:[%s3293_s5 + $0x50] sm:$0xff] }
0x1326   :  { %v1420_v30 = vpop.permute.xlu1 %1419 }
0x1327   :  { %2445 = vmatmul.mubr.msk.f32.vlgmr.msra.gmra.mrb[10].mxu1 %vm177_vm1, %v1420_v30  ;;  %v2617_v30 = vpack.c.bf16 %v2225_v29, %v2224_v28 }
0x1328   :  { %2600 = vmatpush3.bf16.msra.mxu1 %v2597_v31  ;;  %2458 = vmatprep.mubr.msk.f32.mxu1 %vm177_vm1, %v1609_v35  ;;  %v2226_v35 = vld [vmem:[%s3293_s5 + $0x60] sm:$0xff] }
0x1329   :  { %2602 = vmatprep.subr.bf16.mxu1 %v2601_v61 }
0x132b   :  { %2459 = vmatmul.mubr.msk.f32.vlgmr.msra.gmra.mrb[12].mxu1 %vm177_vm1, %v1610_v36  ;;  %v2227_v36 = vld [vmem:[%s3293_s5 + $0x68] sm:$0xff] }
0x132c   :  { %2604 = vmatpush3.bf16.msra.mxu1 %v2601_v61 }
0x132d   :  { %2614 = vmatprep.subr.bf16.mxu1 %v2613_v53 }
0x13fe   :  { %v2460_v38 = vpop.f32.mrb[12].mxu1 }
0x13ff   :  { %v1699_v40 = vmul.f32 %v2460_v38, %v2460_v38  ;;  %v1689_v42 = vpop.f32.mrb[13].mxu1 }
0x1400   :  { %v1698_v43 = vmul.f32 %v1689_v42, %v1689_v42 }
0x1401   :  { %v1703_v44 = vsel %vm177_vm1, %v1699_v40, 0.0  ;;  %v2228_v40 = vld [vmem:[%s3293_s5 + $0x70] sm:$0xff] }
0x1402   :  { %1704 = vadd.xlane.f32.xlu1 %v1703_v44  ;;  %v1700_v45 = vsel %vm177_vm1, %v1698_v43, 0.0 }
0x1403   :  { %1701 = vadd.xlane.f32.xlu0 %v1700_v45 }
0x148f   :  { %v1705_v47 = vpop.xlane.xlu1 %1704 }
0x1490   :  { %v1707_v48 = vmul.f32 0.0625, %v1705_v47  ;;  %v1702_v49 = vpop.xlane.xlu0 %1701 }
0x1491   :  { %v1706_v50 = vmul.f32 0.0625, %v1702_v49 }
0x1492   :  { %v1709_v57 = vadd.f32 1e-06, %v1707_v48 }
0x1493   :  { %v1708_v51 = vadd.f32 1e-06, %v1706_v50 }
0x1494   :  { %2758 = vrsqrt.f32 %v1709_v57 }
0x1495   :  { %2760 = vrsqrt.f32 %v1708_v51 }
0x149e   :  { %v2759_v62 = vpop.eup %2758 }
0x149f   :  { %v2761_v63 = vpop.eup %2760  ;;  %v1713_v0 = vmul.f32 %v2759_v62, %v2460_v38  ;;  %v2621_v38 = vpack.c.bf16 %v2227_v36, %v2226_v35 }
0x14a0   :  { %v1712_v3 = vmul.f32 %v2761_v63, %v1689_v42  ;;  %v2229_v42 = vld [vmem:[%s3293_s5 + $0x78] sm:$0xff] }
0x14a1   :  { %1718 = vrot.lane.b32.xlu1 %v1713_v0, %s2784_s10  ;;  %v2625_v44 = vpack.c.bf16 %v2229_v42, %v2228_v40 }
0x14a2   :  { %1716 = vrot.lane.b32.xlu0 %v1712_v3, %s2784_s10 }
0x1513   :  { %v1719_v4 = vpop.permute.xlu1 %1718 }
0x1514   :  { %v1723_v7 = vmul.f32 %v1719_v4, %v1388_v59  ;;  %v1717_v8 = vpop.permute.xlu0 %1716 }
0x1515   :  { %v1722_v9 = vmul.f32 %v1717_v8, %v3170_v18  ;;  %v2217_v18 = vld [vmem:[%s3292_s4 + $0x38] sm:$0xff] }
0x1516   :  { %1728 = vrot.lane.b32.xlu1 %v1723_v7, %s2787_s23  ;;  %v2609_v19 = vpack.c.bf16 %v2217_v18, %v2216_v32 }
0x1517   :  { %1726 = vrot.lane.b32.xlu0 %v1722_v9, %s2787_s23 }
0x1518   :  { %2610 = vmatprep.subr.bf16.mxu0 %v2609_v19 }
0x1519   :  { %2612 = vmatpush3.bf16.msra.mxu0 %v2609_v19 }
0x1588   :  { %v1729_v11 = vpop.permute.xlu1 %1728 }
0x1589   :  { %v1727_v10 = vpop.permute.xlu0 %1726 }
0x158a   :  { %2465 = vmatprep.mubr.msk.f32.mxu1 %vm177_vm1, %v1727_v10 }
0x158b   :  { %2466 = vmatmul.mubr.msk.f32.vlgmr.msra.gmra.mrb[10].mxu1 %vm177_vm1, %v1729_v11 }
0x158c   :  { %2616 = vmatpush3.bf16.msra.mxu1 %v2613_v53 }
0x158d   :  { %2618 = vmatprep.subr.bf16.mxu1 %v2617_v30 }
0x1590   :  { %2620 = vmatpush3.bf16.msra.mxu1 %v2617_v30 }
0x1591   :  { %2622 = vmatprep.subr.bf16.mxu1 %v2621_v38 }
0x1594   :  { %2624 = vmatpush3.bf16.msra.mxu1 %v2621_v38 }
0x1595   :  { %2626 = vmatprep.subr.bf16.mxu1 %v2625_v44 }
0x1598   :  { %2628 = vmatpush3.bf16.msra.mxu1 %v2625_v44 }
0x165e   :  { %v2467_v12 = vpop.f32.mrb[10].mxu1 }
0x165f   :  { %v3196_v13 = vadd.f32 %v2467_v12, %v3073_v1  ;;  %v1800_v37 = vpop.f32.mrb[11].mxu1  ;;  %v3211_v1 = vld [vmem:[%s3289_s1 + $0x30] sm:$0xff] }
0x1660   :  { %v3199_v34 = vadd.f32 %v1800_v37, %v3076_v22  ;;  %v1830_v22 = vrot.slane %v3211_v1, %v1829_v15 }
0x1661   :  { %v1812_v16 = vmul.f32 %v3196_v13, %v3196_v13 }
0x1662   :  { %v1811_v33 = vmul.f32 %v3199_v34, %v3199_v34 }
0x1663   :  { %v1816_v55 = vsel %vm38_vm0, %v1812_v16, 0.0 }
0x1664   :  { %1817 = vadd.xlane.f32.xlu1 %v1816_v55  ;;  %v1813_v58 = vsel %vm38_vm0, %v1811_v33, 0.0 }
0x1665   :  { %1814 = vadd.xlane.f32.xlu0 %v1813_v58  ;;  %v2061_v58 = vsub.s32 4, %v2842_v5  ;;  %v2072_v5 = vld [vmem:[%s3294_s6 + $0x18] sm:$0xff] }
0x1667   :  { %v2062_v15 = vrot.slane %v3211_v1, %v2061_v58  ;;  %v2633_v1 = vpack.c.bf16 %v2072_v5, %v2071_v39 }
0x167b   :  { %1832 = vrot.lane.b32.xlu0 %v1830_v22, %s2779_s0  ;;  %v2069_v22 = vld [vmem:[%s3294_s6] sm:$0xff] }
0x16f1   :  { %v1818_v20 = vpop.xlane.xlu1 %1817 }
0x16f2   :  { %v1820_v60 = vmul.f32 0.03125, %v1818_v20  ;;  %v1815_v2 = vpop.xlane.xlu0 %1814 }
0x16f3   :  { %v1819_v59 = vmul.f32 0.03125, %v1815_v2 }
0x16f4   :  { %v1822_v21 = vadd.f32 1e-06, %v1820_v60 }
0x16f5   :  { %v1821_v6 = vadd.f32 1e-06, %v1819_v59 }
0x16f6   :  { %2762 = vrsqrt.f32 %v1822_v21  ;;  %v1833_v31 = vpop.permute.xlu0 %1832 }
0x16f7   :  { %2764 = vrsqrt.f32 %v1821_v6 }
0x1700   :  { %v2763_v23 = vpop.eup %2762 }
0x1701   :  { %v2765_v24 = vpop.eup %2764  ;;  %v1826_v25 = vmul.f32 %v2763_v23, %v3196_v13 }
0x1702   :  { %v1825_v54 = vmul.f32 %v2765_v24, %v3199_v34 }
0x1703   :  { %v1836_v14 = vmul.f32 %v1833_v31, %v1826_v25 }
0x1704   :  { %v1835_v26 = vmul.f32 %v1833_v31, %v1825_v54 }
0x1706   :  { %2476 = vmatprep.mubr.msk.f32.mxu0 %vm38_vm0, %v1835_v26 }
0x1707   :  { %2477 = vmatmul.mubr.msk.f32.vlgmr.msra.gmra.mrb[14].mxu0 %vm38_vm0, %v1836_v14 }
0x17da   :  { %v2478_v43 = vpop.f32.mrb[14].mxu0 }
0x17db   :  { %1941 = vrot.lane.b32.xlu0 %v2478_v43, %s2782_s8  ;;  %v1914_v45 = vpop.f32.mrb[15].mxu0  ;;  %v2221_v47 = vmul.f32 -1.442695, %v2478_v43 }
0x17dc   :  { %1939 = vrot.lane.b32.xlu1 %v1914_v45, %s2782_s8  ;;  %v2220_v48 = vmul.f32 -1.442695, %v1914_v45 }
0x17dd   :  { %2766 = vpow2.f32 %v2221_v47 }
0x17de   :  { %2768 = vpow2.f32 %v2220_v48 }
0x17e7   :  { %v2767_v49 = vpop.eup %2766 }
0x17e8   :  { %v2769_v50 = vpop.eup %2768  ;;  %v1930_v57 = vadd.f32 1.0, %v2767_v49 }
0x17e9   :  { %v1929_v51 = vadd.f32 1.0, %v2769_v50 }
0x17ea   :  { %2770 = vrcp.f32 %v1930_v57 }
0x17eb   :  { %2772 = vrcp.f32 %v1929_v51 }
0x17f4   :  { %v2771_v52 = vpop.eup %2770 }
0x17f5   :  { %v2773_v56 = vpop.eup %2772  ;;  %v1936_v61 = vmul.f32 %v2771_v52, %v2478_v43 }
0x17f6   :  { %v1935_v63 = vmul.f32 %v2773_v56, %v1914_v45 }
0x184d   :  { %v1942_v62 = vpop.permute.xlu0 %1941 }
0x184e   :  { %v1946_v0 = vmul.f32 %v1942_v62, %v1936_v61  ;;  %v1940_v3 = vpop.permute.xlu1 %1939 }
0x184f   :  { %v1945_v4 = vmul.f32 %v1940_v3, %v1935_v63 }
0x1850   :  { %1960 = vrot.lane.b32.xlu0 %v1946_v0, %s2782_s8 }
0x1851   :  { %1958 = vrot.lane.b32.xlu1 %v1945_v4, %s2782_s8 }
0x18c2   :  { %v1961_v8 = vpop.permute.xlu0 %1960 }
0x18c3   :  { %v1959_v7 = vpop.permute.xlu1 %1958 }
0x18c4   :  { %2495 = vmatprep.mubr.msk.f32.mxu1 %vm962_vm3, %v1959_v7 }
0x18c5   :  { %2496 = vmatmul.mubr.msk.f32.vlgmr.msra.gmra.mrb[14].mxu1 %vm962_vm3, %v1961_v8 }
0x1998   :  { %v2497_v9 = vpop.f32.mrb[14].mxu1 }
0x1999   :  { %v2042_v10 = vadd.f32 %v3196_v13, %v2497_v9  ;;  %v2032_v11 = vpop.f32.mrb[15].mxu1  ;;  %v2070_v13 = vld [vmem:[%s3294_s6 + $0x8] sm:$0xff] }
0x199a   :  { %v2041_v12 = vadd.f32 %v3199_v34, %v2032_v11  ;;  %v2629_v34 = vpack.c.bf16 %v2070_v13, %v2069_v22 }
0x199b   :  { %v2044_v37 = vmul.f32 %v2042_v10, %v2042_v10 }
0x199c   :  { %v2043_v16 = vmul.f32 %v2041_v12, %v2041_v12  ;;  %2630 = vmatprep.subr.bf16.mxu0 %v2629_v34 }
0x199d   :  { %v2048_v33 = vsel %vm38_vm0, %v2044_v37, 0.0  ;;  %2632 = vmatpush3.bf16.msra.mxu0 %v2629_v34 }
0x199e   :  { %2049 = vadd.xlane.f32.xlu0 %v2048_v33  ;;  %v2045_v55 = vsel %vm38_vm0, %v2043_v16, 0.0  ;;  %2634 = vmatprep.subr.bf16.mxu0 %v2633_v1 }
0x199f   :  { %2046 = vadd.xlane.f32.xlu1 %v2045_v55 }
0x19a1   :  { %2636 = vmatpush3.bf16.msra.mxu0 %v2633_v1 }
0x19b4   :  { %2064 = vrot.lane.b32.xlu0 %v2062_v15, %s2779_s0 }
0x1a2b   :  { %v2050_v41 = vpop.xlane.xlu0 %2049 }
0x1a2c   :  { %v2052_v46 = vmul.f32 0.03125, %v2050_v41  ;;  %v2047_v32 = vpop.xlane.xlu1 %2046 }
0x1a2d   :  { %v2051_v18 = vmul.f32 0.03125, %v2047_v32 }
0x1a2e   :  { %v2054_v19 = vadd.f32 1e-06, %v2052_v46 }
0x1a2f   :  { %v2053_v20 = vadd.f32 1e-06, %v2051_v18  ;;  %v2065_v21 = vpop.permute.xlu0 %2064 }
0x1a30   :  { %2774 = vrsqrt.f32 %v2054_v19 }
0x1a31   :  { %2776 = vrsqrt.f32 %v2053_v20 }
0x1a3a   :  { %v2775_v60 = vpop.eup %2774 }
0x1a3b   :  { %v2777_v2 = vpop.eup %2776  ;;  %v2058_v59 = vmul.f32 %v2775_v60, %v2042_v10 }
0x1a3c   :  { %v2057_v6 = vmul.f32 %v2777_v2, %v2041_v12 }
0x1a3d   :  { %v2068_v24 = vmul.f32 %v2065_v21, %v2058_v59 }
0x1a3e   :  { %v2067_v23 = vmul.f32 %v2065_v21, %v2057_v6 }
0x1a40   :  { %2506 = vmatprep.mubr.msk.f32.mxu0 %vm38_vm0, %v2067_v23 }
0x1a41   :  { %2507 = vmatmul.mubr.msk.f32.vlgmr.msra.gmra.mrb[16].mxu0 %vm38_vm0, %v2068_v24 }
0x1b14   :  { %v2508_v25 = vpop.f32.mrb[16].mxu0 }
0x1b15   :  { %2155 = vst [vmem:[%s3295_s7 + $0x8] sm:$0xff] %v2508_v25  ;;  %v2145_v31 = vpop.f32.mrb[17].mxu0 }
0x1b16   :  { %2154 = vst [vmem:[%s3295_s7] sm:$0xff] %v2145_v31 }

</bundles_post_ra>
